<compile_context>
chip_gen: v5e
topology: v5e:2x2
jax: 0.10.0
libtpu: 0.0.40
codegen_flags: <defaults>
</compile_context>

<pallas_src>
import numpy as np

import jax
import jax.numpy as jnp
from jax import lax
from jax.experimental import pallas as pl
from jax.experimental.pallas import tpu as pltpu

# Keep both the kernel and the pure-JAX reference at near-f32 matmul accuracy
# so the tightened correctness tolerance below is meaningful on TPU.
jax.config.update("jax_default_matmul_precision", "highest")


# ---------------------------------------------------------------------------
# Architecture hyper-parameters (small shapes consistent with setArch()).
# ---------------------------------------------------------------------------
INPUT_SIZE = 16                  # inputSize
NUM_STATE_ENSEMBLES = 4          # numStateEnsembles (E)
STATE_HIDDEN = 32                # stateHiddenLayerSize
STATE_OUT = 16                   # stateEnsembleOutputSize
FEATURE_HIDDEN = 32              # featureHiddenLayerSize
NUM_STATE_FEATURES = 8           # numStateFeatures (F)
NUM_OUTPUT_ENSEMBLES = 2         # numOutputEnsembles
OUTPUT_HIDDEN = 32               # outputEnsembleHiddenLayerSize
OUTPUT_FEATURES = 1              # outputEnsembleFeatures (must be 1: .item())

THALAMUS_SIZE = NUM_STATE_FEATURES * NUM_STATE_ENSEMBLES          # 32
TOTAL_INPUT_SIZE = INPUT_SIZE + THALAMUS_SIZE                     # 48
LANES = 128

# Row offsets inside the packed weight slab (all multiples of 8).
R_WS1_THAL = 0                                                    # (32,128)
R_WS1_INP = R_WS1_THAL + THALAMUS_SIZE                            # 32  (16,128)
R_WLOOP = R_WS1_INP + INPUT_SIZE                                  # 48  (128,128)
R_WS2 = R_WLOOP + NUM_STATE_ENSEMBLES * STATE_HIDDEN              # 176 (128,64)
R_WF1 = R_WS2 + NUM_STATE_ENSEMBLES * STATE_HIDDEN                # 304 (64,128)
R_WF2 = R_WF1 + NUM_STATE_ENSEMBLES * STATE_OUT                   # 368 (128,32 pad)
R_WO1S = R_WF2 + NUM_STATE_ENSEMBLES * FEATURE_HIDDEN             # 496 (2x 16,32 pad)
W_SLAB_ROWS = R_WO1S + NUM_OUTPUT_ENSEMBLES * STATE_OUT           # 528

# Rows inside the packed bias / output-head slab.
B_BS1, B_BS2, B_BF1, B_BF2W, B_BF2, B_HEAD0 = 0, 1, 2, 3, 4, 5
B_SLAB_ROWS = ((B_HEAD0 + NUM_OUTPUT_ENSEMBLES + 7) // 8) * 8     # 8


def _softplus(x):
    # max(x,0) + log(1+exp(-|x|)) matches jax.nn.softplus to < 1e-7 in f32
    # (well inside the tightened test tolerance); keeps to ops with proven
    # Mosaic lowerings.
    return jnp.maximum(x, 0.0) + jnp.log(1.0 + jnp.exp(-jnp.abs(x)))


# ---------------------------------------------------------------------------
# Pallas kernel: full DaBrain.forward
# ---------------------------------------------------------------------------
def _dabrain_kernel(context_ref, action_ref, niter_ref,          # SMEM scalars
                    inputs_ref, thal0_ref, w_ref, b_ref,         # VMEM inputs
                    out_ref):                                    # VMEM output
    context = context_ref[0]
    action = action_ref[0]
    n_iter = niter_ref[0]

    # ---- hoist every weight / bias load out of the recurrent loop ----
    ws1_thal = w_ref[R_WS1_THAL:R_WS1_THAL + THALAMUS_SIZE, :]                # (32,128)
    ws1_inp = w_ref[R_WS1_INP:R_WS1_INP + INPUT_SIZE, :]                      # (16,128)
    w_loop = w_ref[R_WLOOP:R_WLOOP + NUM_STATE_ENSEMBLES * STATE_HIDDEN, :]   # (128,128)
    ws2 = w_ref[R_WS2:R_WS2 + NUM_STATE_ENSEMBLES * STATE_HIDDEN,
                0:NUM_STATE_ENSEMBLES * STATE_OUT]                            # (128,64)
    wf1 = w_ref[R_WF1:R_WF1 + NUM_STATE_ENSEMBLES * STATE_OUT, :]             # (64,128)
    wf2 = w_ref[R_WF2:R_WF2 + NUM_STATE_ENSEMBLES * FEATURE_HIDDEN, :]        # (128,128) pad

    bs1 = b_ref[B_BS1:B_BS1 + 1, :]                                           # (1,128)
    bs2 = b_ref[B_BS2:B_BS2 + 1, 0:NUM_STATE_ENSEMBLES * STATE_OUT]           # (1,64)
    bf1 = b_ref[B_BF1:B_BF1 + 1, :]                                           # (1,128)
    bf2w = b_ref[B_BF2W:B_BF2W + 1, :]                                        # (1,128) = bf2@ws1_thal
    bf2 = b_ref[B_BF2:B_BF2 + 1, :]                                           # (1,128) pad

    # ---- hoisted loop-invariant input projection ----
    base = jnp.dot(inputs_ref[...], ws1_inp,
                   preferred_element_type=jnp.float32) + bs1                  # (1,128)
    base_loop = base + bf2w          # folds the recurrence's bf2 @ ws1_thal term

    # ---- iteration 1: consumes savedThalamusFeatures directly ----
    h = _softplus(jnp.dot(thal0_ref[...], ws1_thal,
                          preferred_element_type=jnp.float32) + base)         # (1,128)
    s = jnp.dot(h, ws2, preferred_element_type=jnp.float32) + bs2             # (1,64)
    g = jnp.maximum(jnp.dot(s, wf1,
                            preferred_element_type=jnp.float32) + bf1, 0.0)   # (1,128)

    # ---- iterations 2..n: 3 serial dots / iteration (wf2 folded into w_loop) ----
    def body(_, carry):
        g_c, _ = carry
        h_c = _softplus(jnp.dot(g_c, w_loop,
                                preferred_element_type=jnp.float32) + base_loop)
        s_c = jnp.dot(h_c, ws2, preferred_element_type=jnp.float32) + bs2
        g_c = jnp.maximum(jnp.dot(s_c, wf1,
                                  preferred_element_type=jnp.float32) + bf1, 0.0)
        return (g_c, s_c)

    g, s = lax.fori_loop(1, n_iter, body, (g, s))

    # ---- epilogue: new thalamus (lanes 0..31) + context-selected output head ----
    thal = jnp.dot(g, wf2, preferred_element_type=jnp.float32) + bf2          # (1,128)

    # stateValues[context]: static 16-lane slices + scalar selects (no shuffle).
    s_ctx = s[:, 0:STATE_OUT]
    for e in range(1, NUM_STATE_ENSEMBLES):
        s_ctx = jnp.where(context == e,
                          s[:, e * STATE_OUT:(e + 1) * STATE_OUT], s_ctx)

    # Output-ensemble head params packed into one slab row per ensemble.
    head = b_ref[B_HEAD0:B_HEAD0 + 1, :]
    for e in range(1, NUM_OUTPUT_ENSEMBLES):
        head = jnp.where(context == e, b_ref[B_HEAD0 + e:B_HEAD0 + e + 1, :], head)
    w1a = head[:, 0:OUTPUT_HIDDEN]                       # action-row weights (1,32)
    b1 = head[:, OUTPUT_HIDDEN:2 * OUTPUT_HIDDEN]        # bo1               (1,32)
    w2 = head[:, 2 * OUTPUT_HIDDEN:3 * OUTPUT_HIDDEN]    # wo2 row           (1,32)
    b2 = head[:, 3 * OUTPUT_HIDDEN:3 * OUTPUT_HIDDEN + 1]  # bo2             (1,1)

    w1s = w_ref[R_WO1S:R_WO1S + STATE_OUT, 0:OUTPUT_HIDDEN]                   # (16,32)
    for e in range(1, NUM_OUTPUT_ENSEMBLES):
        w1s = jnp.where(
            context == e,
            w_ref[R_WO1S + e * STATE_OUT:R_WO1S + (e + 1) * STATE_OUT,
                  0:OUTPUT_HIDDEN],
            w1s)

    # relu(cat([action], s_ctx) @ wo1 + bo1) without the concat.
    ho = jnp.maximum(jnp.dot(s_ctx, w1s, preferred_element_type=jnp.float32)
                     + action * w1a + b1, 0.0)                                # (1,32)
    r = jnp.sum(ho * w2, axis=-1, keepdims=True) + b2                         # (1,1)

    # Single lane-dense output: thalamus in lanes 0..31, reward in lane 32.
    lane = lax.broadcasted_iota(jnp.int32, (1, LANES), 1)
    out_ref[...] = thal + r * (lane == THALAMUS_SIZE).astype(jnp.float32)


# ---------------------------------------------------------------------------
# Wrapper (jit-ed; context / action / num_iterations all dynamic -> 1 compile)
# ---------------------------------------------------------------------------
@jax.jit
def _dabrain_forward_jit(w_slab, b_slab, inputs, action, thal0, context,
                         num_iterations):
    smem = pl.BlockSpec(memory_space=pltpu.MemorySpace.SMEM)
    vmem = pl.BlockSpec(memory_space=pltpu.MemorySpace.VMEM)
    ctx = jnp.reshape(jnp.asarray(context, jnp.int32), (1,))
    act = jnp.reshape(jnp.asarray(action, jnp.float32), (1,))
    nit = jnp.reshape(jnp.asarray(num_iterations, jnp.int32), (1,))

    out = pl.pallas_call(
        _dabrain_kernel,
        out_shape=jax.ShapeDtypeStruct((1, LANES), jnp.float32),
        in_specs=[smem, smem, smem, vmem, vmem, vmem, vmem],
        out_specs=vmem,
    )(ctx, act, nit, inputs, thal0, w_slab, b_slab)
    return out[0, THALAMUS_SIZE], out[:, :THALAMUS_SIZE]


def dabrain_forward(fused, inputs, action, thal0, context, num_iterations):
    """Returns (reward, new_thalamus_features). Mirrors DaBrain.forward."""
    if num_iterations < 1:
        raise ValueError("num iterations was < 1 in DaBrain forward")
    return _dabrain_forward_jit(fused["w_slab"], fused["b_slab"], inputs,
                                action, thal0, context, num_iterations)


# ---------------------------------------------------------------------------
# Pure-JAX reference (mirrors DaBrain.forward semantics, per-ensemble weights)
# ---------------------------------------------------------------------------
def dabrain_forward_ref(params, inputs, action, thal0, context, num_iterations):
    thal = thal0
    svals = [None] * NUM_STATE_ENSEMBLES
    for _ in range(num_iterations):
        x = jnp.concatenate([thal, inputs], axis=-1)
        feats = []
        for e in range(NUM_STATE_ENSEMBLES):
            h = jax.nn.softplus(x @ params["ws1"][e] + params["bs1"][e])
            s = h @ params["ws2"][e] + params["bs2"][e]
            svals[e] = s
            g = jax.nn.relu(s @ params["wf1"][e] + params["bf1"][e])
            f = g @ params["wf2"][e] + params["bf2"][e]
            feats.append(f)
        thal = jnp.concatenate(feats, axis=-1)
    xo = jnp.concatenate(
        [jnp.reshape(jnp.asarray(action, jnp.float32), (1, 1)), svals[context]],
        axis=-1)
    ho = jax.nn.relu(xo @ params["wo1"][context] + params["bo1"][context])
    out = ho @ params["wo2"][context] + params["bo2"][context]
    return out[0, 0], thal


# ---------------------------------------------------------------------------
# Deterministic parameter init (PyTorch Linear-style uniform(+-1/sqrt(fan_in)))
# ---------------------------------------------------------------------------
def _init_linear(key, fan_in, fan_out):
    kw, kb = jax.random.split(key)
    bound = 1.0 / float(fan_in) ** 0.5
    w = jax.random.uniform(kw, (fan_in, fan_out), jnp.float32, -bound, bound)
    b = jax.random.uniform(kb, (1, fan_out), jnp.float32, -bound, bound)
    return w, b


def _init_stack(key, n, fan_in, fan_out):
    ws, bs = [], []
    for k in jax.random.split(key, n):
        w, b = _init_linear(k, fan_in, fan_out)
        ws.append(w)
        bs.append(b)
    return jnp.stack(ws), jnp.stack(bs)


def init_params(seed=0):
    keys = jax.random.split(jax.random.PRNGKey(seed), 6)
    ws1, bs1 = _init_stack(keys[0], NUM_STATE_ENSEMBLES, TOTAL_INPUT_SIZE, STATE_HIDDEN)
    ws2, bs2 = _init_stack(keys[1], NUM_STATE_ENSEMBLES, STATE_HIDDEN, STATE_OUT)
    wf1, bf1 = _init_stack(keys[2], NUM_STATE_ENSEMBLES, STATE_OUT, FEATURE_HIDDEN)
    wf2, bf2 = _init_stack(keys[3], NUM_STATE_ENSEMBLES, FEATURE_HIDDEN, NUM_STATE_FEATURES)
    wo1, bo1 = _init_stack(keys[4], NUM_OUTPUT_ENSEMBLES, STATE_OUT + 1, OUTPUT_HIDDEN)
    wo2, bo2 = _init_stack(keys[5], NUM_OUTPUT_ENSEMBLES, OUTPUT_HIDDEN, OUTPUT_FEATURES)
    return dict(ws1=ws1, bs1=bs1, ws2=ws2, bs2=bs2,
                wf1=wf1, bf1=bf1, wf2=wf2, bf2=bf2,
                wo1=wo1, bo1=bo1, wo2=wo2, bo2=bo2)


# ---------------------------------------------------------------------------
# One-time weight fusion: two lane-dense slabs + wf2 folded into the recurrence
# ---------------------------------------------------------------------------
def _block_diag(blocks):
    e, i, o = blocks.shape
    out = jnp.zeros((e * i, e * o), blocks.dtype)
    for k in range(e):
        out = out.at[k * i:(k + 1) * i, k * o:(k + 1) * o].set(blocks[k])
    return out


def _pad_lanes(x, lanes=LANES):
    return jnp.pad(x, ((0, 0), (0, lanes - x.shape[-1])))


def fuse_params(p):
    E = NUM_STATE_ENSEMBLES
    ws1_f = jnp.concatenate([p["ws1"][e] for e in range(E)], axis=1)   # (48,128)
    ws1_thal = ws1_f[:THALAMUS_SIZE]                                   # (32,128)
    ws1_inp = ws1_f[THALAMUS_SIZE:]                                    # (16,128)
    ws2_bd = _block_diag(p["ws2"])                                     # (128,64)
    wf1_bd = _block_diag(p["wf1"])                                     # (64,128)
    wf2_bd = _block_diag(p["wf2"])                                     # (128,32)
    bs1_f = jnp.concatenate([p["bs1"][e] for e in range(E)], axis=1)   # (1,128)
    bs2_f = jnp.concatenate([p["bs2"][e] for e in range(E)], axis=1)   # (1,64)
    bf1_f = jnp.concatenate([p["bf1"][e] for e in range(E)], axis=1)   # (1,128)
    bf2_f = jnp.concatenate([p["bf2"][e] for e in range(E)], axis=1)   # (1,32)

    # Fold wf2 into the recurrent thalamus projection.  Done in f64 on host so
    # the fold itself adds no f32 rounding error beyond the final cast.
    ws1_thal64 = np.asarray(ws1_thal, np.float64)
    w_loop = jnp.asarray(np.asarray(wf2_bd, np.float64) @ ws1_thal64, jnp.float32)
    bf2_ws1 = jnp.asarray(np.asarray(bf2_f, np.float64) @ ws1_thal64, jnp.float32)

    w_slab = jnp.concatenate(
        [ws1_thal,                       # rows   0.. 31
         ws1_inp,                        # rows  32.. 47
         w_loop,                         # rows  48..175
         _pad_lanes(ws2_bd),             # rows 176..303 (lanes 0..63 valid)
         wf1_bd,                         # rows 304..367
         _pad_lanes(wf2_bd)]             # rows 368..495 (lanes 0..31 valid)
        + [_pad_lanes(p["wo1"][e, 1:, :]) for e in range(NUM_OUTPUT_ENSEMBLES)],
        axis=0)                          # rows 496..527 (lanes 0..31 valid)
    assert w_slab.shape == (W_SLAB_ROWS, LANES)

    b_slab = jnp.zeros((B_SLAB_ROWS, LANES), jnp.float32)
    b_slab = b_slab.at[B_BS1, :].set(bs1_f[0])
    b_slab = b_slab.at[B_BS2, :E * STATE_OUT].set(bs2_f[0])
    b_slab = b_slab.at[B_BF1, :].set(bf1_f[0])
    b_slab = b_slab.at[B_BF2W, :].set(bf2_ws1[0])
    b_slab = b_slab.at[B_BF2, :THALAMUS_SIZE].set(bf2_f[0])
    for e in range(NUM_OUTPUT_ENSEMBLES):
        row = B_HEAD0 + e
        b_slab = b_slab.at[row, 0:OUTPUT_HIDDEN].set(p["wo1"][e, 0, :])
        b_slab = b_slab.at[row, OUTPUT_HIDDEN:2 * OUTPUT_HIDDEN].set(p["bo1"][e, 0, :])
        b_slab = b_slab.at[row, 2 * OUTPUT_HIDDEN:3 * OUTPUT_HIDDEN].set(p["wo2"][e, :, 0])
        b_slab = b_slab.at[row, 3 * OUTPUT_HIDDEN].set(p["bo2"][e, 0, 0])
    return dict(w_slab=w_slab, b_slab=b_slab)


if __name__ == "__main__":
    raw = init_params(seed=0)
    fused = fuse_params(raw)

    key = jax.random.PRNGKey(0)
    k_in, k_th = jax.random.split(key)
    inputs = jax.random.normal(k_in, (1, INPUT_SIZE), jnp.float32)
    action = 2.0

    thal_cases = [
        jnp.zeros((1, THALAMUS_SIZE), jnp.float32),                 # resetThalamus()
        0.5 * jax.random.normal(k_th, (1, THALAMUS_SIZE), jnp.float32),
    ]

    # One compile total: context / action / num_iterations are all dynamic.
    for thal0 in thal_cases:
        for context in range(NUM_OUTPUT_ENSEMBLES):
            for num_iterations in (1, 3):
                reward, thal_new = dabrain_forward(
                    fused, inputs, action, thal0, context, num_iterations)
                reward = jax.block_until_ready(reward)
                thal_new = jax.block_until_ready(thal_new)

                reward_ref, thal_ref = dabrain_forward_ref(
                    raw, inputs, action, thal0, context, num_iterations)

                # Tolerance tightened 200x vs. previous 1e-2 (real fusion bugs
                # are O(1e-1)); small headroom left for f32 reassociation from
                # the wf2 (x) ws1_thal fold.
                assert jnp.allclose(reward, reward_ref, rtol=1e-4, atol=5e-5), (
                    context, num_iterations, float(reward), float(reward_ref))
                assert jnp.allclose(thal_new, thal_ref, rtol=1e-4, atol=5e-5), (
                    context, num_iterations)

    # TODO(synk): pickAction (epsilon-greedy action sweep) and updateWeights
    # (per-ensemble SGD steps) are host-side control / training logic with no
    # kernel hot path; the action sweep could be batched through one call.
    print("KERNEL_OK")
</pallas_src>

<mosaic_0001>
module attributes {stable_mosaic.version = 11 : i64} {
  func.func @_dabrain_kernel(%arg0: memref<1xi32, #tpu.memory_space<smem>>, %arg1: memref<1xf32, #tpu.memory_space<smem>>, %arg2: memref<1xi32, #tpu.memory_space<smem>>, %arg3: memref<1x16xf32, #tpu.memory_space<vmem>>, %arg4: memref<1x32xf32, #tpu.memory_space<vmem>>, %arg5: memref<528x128xf32, #tpu.memory_space<vmem>>, %arg6: memref<8x128xf32, #tpu.memory_space<vmem>>, %arg7: memref<1x128xf32, #tpu.memory_space<vmem>>) attributes {dimension_semantics = [], scalar_prefetch = 0 : i64, scratch_operands = 0 : i64, tpu.core_type = #tpu.core_type<tc>} {
    %c0 = arith.constant 0 : index
    %0 = memref.load %arg0[%c0] : memref<1xi32, #tpu.memory_space<smem>>
    %c0_0 = arith.constant 0 : index
    %1 = memref.load %arg1[%c0_0] : memref<1xf32, #tpu.memory_space<smem>>
    %c0_1 = arith.constant 0 : index
    %2 = memref.load %arg2[%c0_1] : memref<1xi32, #tpu.memory_space<smem>>
    %c0_2 = arith.constant 0 : index
    %c0_3 = arith.constant 0 : index
    %3 = vector.load %arg5[%c0_2, %c0_3] : memref<528x128xf32, #tpu.memory_space<vmem>>, vector<32x128xf32>
    %c32 = arith.constant 32 : index
    %c0_4 = arith.constant 0 : index
    %4 = vector.load %arg5[%c32, %c0_4] : memref<528x128xf32, #tpu.memory_space<vmem>>, vector<16x128xf32>
    %c48 = arith.constant 48 : index
    %c0_5 = arith.constant 0 : index
    %5 = vector.load %arg5[%c48, %c0_5] : memref<528x128xf32, #tpu.memory_space<vmem>>, vector<128x128xf32>
    %c176 = arith.constant 176 : index
    %c0_6 = arith.constant 0 : index
    %6 = vector.load %arg5[%c176, %c0_6] : memref<528x128xf32, #tpu.memory_space<vmem>>, vector<128x64xf32>
    %c304 = arith.constant 304 : index
    %c0_7 = arith.constant 0 : index
    %7 = vector.load %arg5[%c304, %c0_7] : memref<528x128xf32, #tpu.memory_space<vmem>>, vector<64x128xf32>
    %c368 = arith.constant 368 : index
    %c0_8 = arith.constant 0 : index
    %8 = vector.load %arg5[%c368, %c0_8] : memref<528x128xf32, #tpu.memory_space<vmem>>, vector<128x128xf32>
    %c0_9 = arith.constant 0 : index
    %c0_10 = arith.constant 0 : index
    %9 = vector.load %arg6[%c0_9, %c0_10] : memref<8x128xf32, #tpu.memory_space<vmem>>, vector<1x128xf32>
    %c1 = arith.constant 1 : index
    %c0_11 = arith.constant 0 : index
    %10 = vector.load %arg6[%c1, %c0_11] : memref<8x128xf32, #tpu.memory_space<vmem>>, vector<1x64xf32>
    %c2 = arith.constant 2 : index
    %c0_12 = arith.constant 0 : index
    %11 = vector.load %arg6[%c2, %c0_12] : memref<8x128xf32, #tpu.memory_space<vmem>>, vector<1x128xf32>
    %c3 = arith.constant 3 : index
    %c0_13 = arith.constant 0 : index
    %12 = vector.load %arg6[%c3, %c0_13] : memref<8x128xf32, #tpu.memory_space<vmem>>, vector<1x128xf32>
    %c4 = arith.constant 4 : index
    %c0_14 = arith.constant 0 : index
    %13 = vector.load %arg6[%c4, %c0_14] : memref<8x128xf32, #tpu.memory_space<vmem>>, vector<1x128xf32>
    %c0_15 = arith.constant 0 : index
    %c0_16 = arith.constant 0 : index
    %14 = vector.load %arg3[%c0_15, %c0_16] : memref<1x16xf32, #tpu.memory_space<vmem>>, vector<1x16xf32>
    %cst = arith.constant dense<0.000000e+00> : vector<1x128xf32>
    %15 = tpu.matmul %14, %4, %cst {dimension_numbers = #tpu.dot_dimension_numbers<[1], [0], [0], [1], [0, 0, 1, 1], [], []>, precision = #tpu.contract_precision<fp32>} : vector<1x16xf32>, vector<16x128xf32>, vector<1x128xf32> -> vector<1x128xf32>
    %16 = arith.addf %15, %9 : vector<1x128xf32>
    %17 = arith.addf %16, %12 : vector<1x128xf32>
    %c0_17 = arith.constant 0 : index
    %c0_18 = arith.constant 0 : index
    %18 = vector.load %arg4[%c0_17, %c0_18] : memref<1x32xf32, #tpu.memory_space<vmem>>, vector<1x32xf32>
    %cst_19 = arith.constant dense<0.000000e+00> : vector<1x128xf32>
    %19 = tpu.matmul %18, %3, %cst_19 {dimension_numbers = #tpu.dot_dimension_numbers<[1], [0], [0], [1], [0, 0, 1, 1], [], []>, precision = #tpu.contract_precision<fp32>} : vector<1x32xf32>, vector<32x128xf32>, vector<1x128xf32> -> vector<1x128xf32>
    %20 = arith.addf %19, %16 : vector<1x128xf32>
    %cst_20 = arith.constant 0.000000e+00 : f32
    %21 = vector.broadcast %cst_20 : f32 to vector<1x128xf32>
    %22 = arith.maximumf %20, %21 : vector<1x128xf32>
    %23 = math.absf %20 : vector<1x128xf32>
    %cst_21 = arith.constant 0.000000e+00 : f32
    %24 = vector.broadcast %cst_21 : f32 to vector<1x128xf32>
    %25 = arith.subf %24, %23 : vector<1x128xf32>
    %26 = math.exp %25 : vector<1x128xf32>
    %cst_22 = arith.constant 1.000000e+00 : f32
    %27 = vector.broadcast %cst_22 : f32 to vector<1x128xf32>
    %28 = arith.addf %27, %26 : vector<1x128xf32>
    %29 = math.log %28 : vector<1x128xf32>
    %30 = arith.addf %22, %29 : vector<1x128xf32>
    %cst_23 = arith.constant dense<0.000000e+00> : vector<1x64xf32>
    %31 = tpu.matmul %30, %6, %cst_23 {dimension_numbers = #tpu.dot_dimension_numbers<[1], [0], [0], [1], [0, 0, 1, 1], [], []>, precision = #tpu.contract_precision<fp32>} : vector<1x128xf32>, vector<128x64xf32>, vector<1x64xf32> -> vector<1x64xf32>
    %32 = arith.addf %31, %10 : vector<1x64xf32>
    %cst_24 = arith.constant dense<0.000000e+00> : vector<1x128xf32>
    %33 = tpu.matmul %32, %7, %cst_24 {dimension_numbers = #tpu.dot_dimension_numbers<[1], [0], [0], [1], [0, 0, 1, 1], [], []>, precision = #tpu.contract_precision<fp32>} : vector<1x64xf32>, vector<64x128xf32>, vector<1x128xf32> -> vector<1x128xf32>
    %34 = arith.addf %33, %11 : vector<1x128xf32>
    %cst_25 = arith.constant 0.000000e+00 : f32
    %35 = vector.broadcast %cst_25 : f32 to vector<1x128xf32>
    %36 = arith.maximumf %34, %35 : vector<1x128xf32>
    %c1_i32 = arith.constant 1 : i32
    %37 = arith.subi %2, %c1_i32 : i32
    %38 = arith.addi %c1_i32, %37 : i32
    %c1_i32_26 = arith.constant 1 : i32
    %39:2 = scf.for %arg8 = %c1_i32 to %38 step %c1_i32_26 iter_args(%arg9 = %36, %arg10 = %32) -> (vector<1x128xf32>, vector<1x64xf32>)  : i32 {
      %cst_40 = arith.constant dense<0.000000e+00> : vector<1x128xf32>
      %84 = tpu.matmul %arg9, %5, %cst_40 {dimension_numbers = #tpu.dot_dimension_numbers<[1], [0], [0], [1], [0, 0, 1, 1], [], []>, precision = #tpu.contract_precision<fp32>} : vector<1x128xf32>, vector<128x128xf32>, vector<1x128xf32> -> vector<1x128xf32>
      %85 = arith.addf %84, %17 : vector<1x128xf32>
      %cst_41 = arith.constant 0.000000e+00 : f32
      %86 = vector.broadcast %cst_41 : f32 to vector<1x128xf32>
      %87 = arith.maximumf %85, %86 : vector<1x128xf32>
      %88 = math.absf %85 : vector<1x128xf32>
      %cst_42 = arith.constant 0.000000e+00 : f32
      %89 = vector.broadcast %cst_42 : f32 to vector<1x128xf32>
      %90 = arith.subf %89, %88 : vector<1x128xf32>
      %91 = math.exp %90 : vector<1x128xf32>
      %cst_43 = arith.constant 1.000000e+00 : f32
      %92 = vector.broadcast %cst_43 : f32 to vector<1x128xf32>
      %93 = arith.addf %92, %91 : vector<1x128xf32>
      %94 = math.log %93 : vector<1x128xf32>
      %95 = arith.addf %87, %94 : vector<1x128xf32>
      %cst_44 = arith.constant dense<0.000000e+00> : vector<1x64xf32>
      %96 = tpu.matmul %95, %6, %cst_44 {dimension_numbers = #tpu.dot_dimension_numbers<[1], [0], [0], [1], [0, 0, 1, 1], [], []>, precision = #tpu.contract_precision<fp32>} : vector<1x128xf32>, vector<128x64xf32>, vector<1x64xf32> -> vector<1x64xf32>
      %97 = arith.addf %96, %10 : vector<1x64xf32>
      %cst_45 = arith.constant dense<0.000000e+00> : vector<1x128xf32>
      %98 = tpu.matmul %97, %7, %cst_45 {dimension_numbers = #tpu.dot_dimension_numbers<[1], [0], [0], [1], [0, 0, 1, 1], [], []>, precision = #tpu.contract_precision<fp32>} : vector<1x64xf32>, vector<64x128xf32>, vector<1x128xf32> -> vector<1x128xf32>
      %99 = arith.addf %98, %11 : vector<1x128xf32>
      %cst_46 = arith.constant 0.000000e+00 : f32
      %100 = vector.broadcast %cst_46 : f32 to vector<1x128xf32>
      %101 = arith.maximumf %99, %100 : vector<1x128xf32>
      scf.yield %101, %97 : vector<1x128xf32>, vector<1x64xf32>
    }
    %cst_27 = arith.constant dense<0.000000e+00> : vector<1x128xf32>
    %40 = tpu.matmul %39#0, %8, %cst_27 {dimension_numbers = #tpu.dot_dimension_numbers<[1], [0], [0], [1], [0, 0, 1, 1], [], []>, precision = #tpu.contract_precision<fp32>} : vector<1x128xf32>, vector<128x128xf32>, vector<1x128xf32> -> vector<1x128xf32>
    %41 = arith.addf %40, %13 : vector<1x128xf32>
    %42 = vector.extract_strided_slice %39#1 {offsets = [0, 0], sizes = [1, 16], strides = [1, 1]} : vector<1x64xf32> to vector<1x16xf32>
    %c1_i32_28 = arith.constant 1 : i32
    %43 = arith.cmpi eq, %0, %c1_i32_28 : i32
    %44 = vector.extract_strided_slice %39#1 {offsets = [0, 16], sizes = [1, 16], strides = [1, 1]} : vector<1x64xf32> to vector<1x16xf32>
    %45 = arith.select %43, %44, %42 : vector<1x16xf32>
    %c2_i32 = arith.constant 2 : i32
    %46 = arith.cmpi eq, %0, %c2_i32 : i32
    %47 = vector.extract_strided_slice %39#1 {offsets = [0, 32], sizes = [1, 16], strides = [1, 1]} : vector<1x64xf32> to vector<1x16xf32>
    %48 = arith.select %46, %47, %45 : vector<1x16xf32>
    %c3_i32 = arith.constant 3 : i32
    %49 = arith.cmpi eq, %0, %c3_i32 : i32
    %50 = vector.extract_strided_slice %39#1 {offsets = [0, 48], sizes = [1, 16], strides = [1, 1]} : vector<1x64xf32> to vector<1x16xf32>
    %51 = arith.select %49, %50, %48 : vector<1x16xf32>
    %c5 = arith.constant 5 : index
    %c0_29 = arith.constant 0 : index
    %52 = vector.load %arg6[%c5, %c0_29] : memref<8x128xf32, #tpu.memory_space<vmem>>, vector<1x128xf32>
    %c1_i32_30 = arith.constant 1 : i32
    %53 = arith.cmpi eq, %0, %c1_i32_30 : i32
    %c6 = arith.constant 6 : index
    %c0_31 = arith.constant 0 : index
    %54 = vector.load %arg6[%c6, %c0_31] : memref<8x128xf32, #tpu.memory_space<vmem>>, vector<1x128xf32>
    %55 = arith.select %53, %54, %52 : vector<1x128xf32>
    %56 = vector.extract_strided_slice %55 {offsets = [0, 0], sizes = [1, 32], strides = [1, 1]} : vector<1x128xf32> to vector<1x32xf32>
    %57 = vector.extract_strided_slice %55 {offsets = [0, 32], sizes = [1, 32], strides = [1, 1]} : vector<1x128xf32> to vector<1x32xf32>
    %58 = vector.extract_strided_slice %55 {offsets = [0, 64], sizes = [1, 32], strides = [1, 1]} : vector<1x128xf32> to vector<1x32xf32>
    %59 = vector.extract_strided_slice %55 {offsets = [0, 96], sizes = [1, 1], strides = [1, 1]} : vector<1x128xf32> to vector<1x1xf32>
    %c496 = arith.constant 496 : index
    %c0_32 = arith.constant 0 : index
    %60 = vector.load %arg5[%c496, %c0_32] : memref<528x128xf32, #tpu.memory_space<vmem>>, vector<16x32xf32>
    %c1_i32_33 = arith.constant 1 : i32
    %61 = arith.cmpi eq, %0, %c1_i32_33 : i32
    %c512 = arith.constant 512 : index
    %c0_34 = arith.constant 0 : index
    %62 = vector.load %arg5[%c512, %c0_34] : memref<528x128xf32, #tpu.memory_space<vmem>>, vector<16x32xf32>
    %63 = arith.select %61, %62, %60 : vector<16x32xf32>
    %cst_35 = arith.constant dense<0.000000e+00> : vector<1x32xf32>
    %64 = tpu.matmul %51, %63, %cst_35 {dimension_numbers = #tpu.dot_dimension_numbers<[1], [0], [0], [1], [0, 0, 1, 1], [], []>, precision = #tpu.contract_precision<fp32>} : vector<1x16xf32>, vector<16x32xf32>, vector<1x32xf32> -> vector<1x32xf32>
    %65 = vector.broadcast %1 : f32 to vector<1x32xf32>
    %66 = arith.mulf %65, %56 : vector<1x32xf32>
    %67 = arith.addf %64, %66 : vector<1x32xf32>
    %68 = arith.addf %67, %57 : vector<1x32xf32>
    %cst_36 = arith.constant 0.000000e+00 : f32
    %69 = vector.broadcast %cst_36 : f32 to vector<1x32xf32>
    %70 = arith.maximumf %68, %69 : vector<1x32xf32>
    %71 = arith.mulf %70, %58 : vector<1x32xf32>
    %cst_37 = arith.constant dense<0.000000e+00> : vector<1xf32>
    %72 = vector.multi_reduction <add>, %71, %cst_37 [1] : vector<1x32xf32> to vector<1xf32>
    %73 = vector.shape_cast %72 : vector<1xf32> to vector<1x1xf32>
    %74 = arith.addf %73, %59 : vector<1x1xf32>
    %75 = tpu.iota {dimensions = array<i32: 1>} : vector<1x128xi32>
    %c32_i32 = arith.constant 32 : i32
    %76 = vector.broadcast %c32_i32 : i32 to vector<1x128xi32>
    %77 = arith.cmpi eq, %75, %76 : vector<1x128xi32>
    %78 = arith.extui %77 : vector<1x128xi1> to vector<1x128xi32>
    %79 = arith.sitofp %78 : vector<1x128xi32> to vector<1x128xf32>
    %80 = vector.broadcast %74 : vector<1x1xf32> to vector<1x128xf32>
    %81 = arith.mulf %80, %79 : vector<1x128xf32>
    %82 = arith.addf %41, %81 : vector<1x128xf32>
    %c0_38 = arith.constant 0 : index
    %c0_39 = arith.constant 0 : index
    %83 = vector.load %arg7[%c0_38, %c0_39] : memref<1x128xf32, #tpu.memory_space<vmem>>, vector<1x128xf32>
    tpu.vector_store %arg7[%c0_38, %c0_39], %82 {strides = array<i32>} : memref<1x128xf32, #tpu.memory_space<vmem>>, vector<1x128xf32>,
    return
  }
}

</mosaic_0001>

<bundles_post_ra>
// kernel: _dabrain_forward_jit.1
= control target key start
LH: loop header
LB: loop body
LE: loop exit
PB: predicated region body
PF: predicated region fallthrough
CT: control target
= control target key end

     0   :  { %15 = vsyncpa [#allocation6], 0  ;;  %s2700_s27 = smov [#allocation5]   ;;  %s2701_s29 = smov 128   ;;  %s4118_s0 = inlined_call_operand.<no memory space> [shape: s32[1], index: 0, kind: input, shape index: {}]   ;;  %s4119_s1 = inlined_call_operand.<no memory space> [shape: f32[1], index: 1, kind: input, shape index: {}]   ;;  %s4120_s2 = inlined_call_operand.<no memory space> [shape: s32[1], index: 2, kind: input, shape index: {}]   ;;  %s4121_s3 = inlined_call_operand.vmem [shape: f32[1,16], index: 3, kind: input, shape index: {}]   ;;  %s4122_s4 = inlined_call_operand.vmem [shape: f32[1,32], index: 4, kind: input, shape index: {}]   ;;  %s4123_s5 = inlined_call_operand.hbm [shape: f32[528,128], index: 5, kind: input, shape index: {}]   ;;  %s4124_s6 = inlined_call_operand.vmem [shape: f32[8,128], index: 6, kind: input, shape index: {}]   ;;  %s4125_s7 = inlined_call_operand.vmem [shape: f32[1,128], index: 7, kind: output, shape index: {}]  }
   0x1   :  { %s30_s26 = sshll.u32 %s4123_s5, 4  ;;  %s32_s28 = sshll.u32 %s2700_s27, 4  ;;  %s31_s26 = int_to_ptr.hbm [resolvable:$true] %s30_s26  ;;  %s33_s28 = int_to_ptr.vmem [resolvable:$true] %s32_s28 }
   0x2   :  { %s2702_s30 = smov 8  }
   0x3   :  { %38 = dma.hbm_to_vmem [thread:$0]  %s31_s26, 8448, %s33_s28, [#allocation6], %s2701_s29, %s2701_s29, %s2702_s30  }
   0x4   :  { %2682 = dma.done.wait [#allocation6], 8448  }
   0x5   :  { %2683 = vsyncadd [#allocation6], 4294958848  ;;  %v2752_v0 = vld [vmem:[#allocation5 + $0x30] sm:$0xff]  ;;  %v2754_v1 = vld [vmem:[#allocation5 + $0x38] sm:$0xff]  ;;  %vm116_vm0 = vcmask 130048   ;;  %vm281_vm1 = vcmask 261120  }
   0x6   :  { %4257 = vst [vmem:[#allocation8_spill] sm:$0xff] %v2752_v0  ;;  %v2756_v2 = vld [vmem:[#allocation5 + $0x40] sm:$0xff]  ;;  %v2758_v3 = vld [vmem:[#allocation5 + $0x48] sm:$0xff]  ;;  %v2760_v4 = vld [vmem:[#allocation5 + $0x50] sm:$0xff]  ;;  %vm820_vm2 = vcmask 523264   ;;  %p2589_p0 = scmp.le.s32.totalorder %s4120_s2, 1 }
   0x7   :  { %4258 = vst [vmem:[#allocation9_spill] sm:$0xff] %v2754_v1  ;;  %v2762_v5 = vld [vmem:[#allocation5 + $0x58] sm:$0xff]  ;;  %v2764_v6 = vld [vmem:[#allocation5 + $0x60] sm:$0xff]  ;;  %v2766_v7 = vld [vmem:[#allocation5 + $0x68] sm:$0xff]  ;;  %s3330_s21 = smov (!%p2589_p0), 1  }
   0x8   :  { %4259 = vst [vmem:[#allocation10_spill] sm:$0xff] %v2756_v2  ;;  %v2768_v8 = vld [vmem:[#allocation5 + $0x70] sm:$0xff]  ;;  %v2770_v9 = vld [vmem:[#allocation5 + $0x78] sm:$0xff]  ;;  %v2772_v10 = vld [vmem:[#allocation5 + $0x80] sm:$0xff] }
   0x9   :  { %4260 = vst [vmem:[#allocation11_spill] sm:$0xff] %v2758_v3  ;;  %v2774_v11 = vld [vmem:[#allocation5 + $0x88] sm:$0xff]  ;;  %v2776_v12 = vld [vmem:[#allocation5 + $0x90] sm:$0xff]  ;;  %v2778_v13 = vld [vmem:[#allocation5 + $0x98] sm:$0xff] }
   0xa   :  { %4261 = vst [vmem:[#allocation12_spill] sm:$0xff] %v2760_v4  ;;  %v2780_v14 = vld [vmem:[#allocation5 + $0xa0] sm:$0xff]  ;;  %v2782_v15 = vld [vmem:[#allocation5 + $0xa8] sm:$0xff]  ;;  %v2784_v16 = vld [vmem:[#allocation5 + $0x170] sm:$0xff] }
   0xb   :  { %4262 = vst [vmem:[#allocation13_spill] sm:$0xff] %v2762_v5  ;;  %v2786_v17 = vld [vmem:[#allocation5 + $0x178] sm:$0xff]  ;;  %v2788_v18 = vld [vmem:[#allocation5 + $0x180] sm:$0xff]  ;;  %v2790_v19 = vld [vmem:[#allocation5 + $0x188] sm:$0xff] }
   0xc   :  { %4263 = vst [vmem:[#allocation14_spill] sm:$0xff] %v2764_v6  ;;  %v2792_v20 = vld [vmem:[#allocation5 + $0x190] sm:$0xff]  ;;  %v2794_v21 = vld [vmem:[#allocation5 + $0x198] sm:$0xff]  ;;  %v2796_v22 = vld [vmem:[#allocation5 + $0x1a0] sm:$0xff] }
   0xd   :  { %4264 = vst [vmem:[#allocation15_spill] sm:$0xff] %v2766_v7  ;;  %v2798_v23 = vld [vmem:[#allocation5 + $0x1a8] sm:$0xff]  ;;  %v2800_v24 = vld [vmem:[#allocation5 + $0x1b0] sm:$0xff]  ;;  %v2802_v25 = vld [vmem:[#allocation5 + $0x1b8] sm:$0xff] }
   0xe   :  { %4265 = vst [vmem:[#allocation16_spill] sm:$0xff] %v2768_v8  ;;  %v2804_v26 = vld [vmem:[#allocation5 + $0x1c0] sm:$0xff]  ;;  %v2806_v27 = vld [vmem:[#allocation5 + $0x1c8] sm:$0xff]  ;;  %v2808_v28 = vld [vmem:[#allocation5 + $0x1d0] sm:$0xff] }
   0xf   :  { %4266 = vst [vmem:[#allocation17_spill] sm:$0xff] %v2770_v9  ;;  %v2810_v29 = vld [vmem:[#allocation5 + $0x1d8] sm:$0xff]  ;;  %v2812_v30 = vld [vmem:[#allocation5 + $0x1e0] sm:$0xff]  ;;  %v2814_v31 = vld [vmem:[#allocation5 + $0x1e8] sm:$0xff] }
  0x10   :  { %4267 = vst [vmem:[#allocation18_spill] sm:$0xff] %v2772_v10  ;;  %v2819_v32 = vld [vmem:[%s4124_s6 + $0x4] sm:$0x1]  ;;  %v53_v33 = vld [vmem:[#allocation5 + $0x28] sm:$0xff]  ;;  %v115_v35 = vld [vmem:[%s4121_s3] sm:$0x1] }
  0x11   :  { %4268 = vst [vmem:[#allocation19_spill] sm:$0xff] %v2774_v11  ;;  %v52_v34 = vld [vmem:[#allocation5 + $0x20] sm:$0xff]  ;;  %v134_v36 = vand.u32 4294901760, %v53_v33  ;;  %v118_v38 = vsel %vm116_vm0, %v115_v35, 0  ;;  %v51_v39 = vld [vmem:[#allocation5 + $0x18] sm:$0xff]  ;;  %v50_v40 = vld [vmem:[#allocation5 + $0x10] sm:$0xff] }
  0x12   :  { %4269 = vst [vmem:[#allocation20_spill] sm:$0xff] %v2776_v12  ;;  %v2824_v37 = vand.u32 4294901760, %v52_v34  ;;  %v49_v41 = vld [vmem:[#allocation5 + $0x8] sm:$0xff]  ;;  %v138_v42 = vand.u32 4294901760, %v118_v38  ;;  %v2827_v43 = vand.u32 4294901760, %v51_v39  ;;  %v2829_v44 = vand.u32 4294901760, %v50_v40 }
  0x13   :  { %4270 = vst [vmem:[#allocation21_spill] sm:$0xff] %v2778_v13  ;;  %v48_v45 = vld [vmem:[#allocation5] sm:$0xff]  ;;  %135 = vmatpush.msra.mxu2 %v134_v36  ;;  %v162_v46 = vsub.f32 %v53_v33, %v134_v36  ;;  %v2832_v48 = vand.u32 4294901760, %v49_v41  ;;  %271 = vmatpush.msra.mxu1 %v134_v36 }
  0x14   :  { %4271 = vst [vmem:[#allocation22_spill] sm:$0xff] %v2780_v14  ;;  %v168_v47 = vsub.f32 %v52_v34, %v2824_v37  ;;  %v280_v49 = vld [vmem:[%s4122_s4] sm:$0x1]  ;;  %v2837_v50 = vsub.f32 %v118_v38, %v138_v42  ;;  %v327_v51 = vsub.f32 %v51_v39, %v2827_v43  ;;  %v2841_v52 = vsub.f32 %v50_v40, %v2829_v44 }
  0x15   :  { %4272 = vst [vmem:[#allocation23_spill] sm:$0xff] %v2782_v15  ;;  %137 = vmatpush.msra.mxu2 %v2824_v37  ;;  %v163_v53 = vand.u32 4294901760, %v162_v46  ;;  %v2844_v55 = vand.u32 4294901760, %v48_v45  ;;  %v283_v56 = vsel %vm281_vm1, %v280_v49, 0  ;;  %273 = vmatpush.msra.mxu1 %v2824_v37  ;;  %v339_v61 = vsub.f32 %v49_v41, %v2832_v48 }
  0x16   :  { %4273 = vst [vmem:[#allocation24_spill] sm:$0xff] %v2784_v16  ;;  %v169_v54 = vand.u32 4294901760, %v168_v47  ;;  %v140_v57 = vand.u32 4294901760, %v2837_v50  ;;  %v328_v58 = vand.u32 4294901760, %v327_v51  ;;  %275 = vmatmul.f32.vlgmr.msra.gmra.mxu1 %v138_v42  ;;  %v334_v63 = vand.u32 4294901760, %v2841_v52 }
  0x17   :  { %4274 = vst [vmem:[#allocation25_spill] sm:$0xff] %v2786_v17  ;;  %194 = vmatpush.msrb.mxu2 %v162_v46  ;;  %v164_v59 = vsub.f32 %v162_v46, %v163_v53  ;;  %246 = vmatpush.msra.mxu0 %v163_v53  ;;  %v305_v33 = vand.u32 4294901760, %v283_v56  ;;  %v345_v38 = vsub.f32 %v48_v45, %v2844_v55  ;;  %v340_v41 = vand.u32 4294901760, %v339_v61  ;;  %v76_v17 = vld [vmem:[#allocation5 + $0xe0] sm:$0xff] }
  0x18   :  { %4275 = vst [vmem:[#allocation26_spill] sm:$0xff] %v2788_v18  ;;  %v170_v60 = vsub.f32 %v168_v47, %v169_v54  ;;  %398 = vmatpush.msrb.mxu1 %v2827_v43  ;;  %v141_v62 = vsub.f32 %v2837_v50, %v140_v57  ;;  %v329_v40 = vsub.f32 %v327_v51, %v328_v58 }
  0x19   :  { %4276 = vst [vmem:[#allocation27_spill] sm:$0xff] %v2790_v19  ;;  %197 = vmatpush.msrb.mxu2 %v168_v47  ;;  %v165_v34 = vand.u32 4294901760, %v164_v59  ;;  %250 = vmatpush.msra.mxu0 %v169_v54  ;;  %v335_v46 = vsub.f32 %v2841_v52, %v334_v63  ;;  %v306_v47 = vsub.f32 %v283_v56, %v305_v33  ;;  %v346_v49 = vand.u32 4294901760, %v345_v38 }
  0x1a   :  { %4277 = vst [vmem:[#allocation28_spill] sm:$0xff] %v2792_v20  ;;  %v171_v35 = vand.u32 4294901760, %v170_v60  ;;  %400 = vmatpush.msrb.mxu1 %v2829_v44  ;;  %v142_v39 = vand.u32 4294901760, %v141_v62  ;;  %252 = vmatmul.f32.vlgmr.msra.gmra.mxu0 %v138_v42  ;;  %v330_v45 = vand.u32 4294901760, %v329_v40  ;;  %v341_v53 = vsub.f32 %v339_v61, %v340_v41 }
  0x1b   :  { %4278 = vst [vmem:[#allocation29_spill] sm:$0xff] %v2794_v21  ;;  %166 = vmatpush.msra.mxu3 %v165_v34  ;;  %369 = vmatpush.msrb.mxu0 %v327_v51  ;;  %v336_v54 = vand.u32 4294901760, %v335_v46  ;;  %v307_v51 = vand.u32 4294901760, %v306_v47  ;;  %v347_v56 = vsub.f32 %v345_v38, %v346_v49  ;;  %v75_v21 = vld [vmem:[#allocation5 + $0xd8] sm:$0xff] }
  0x1c   :  { %4279 = vst [vmem:[#allocation30_spill] sm:$0xff] %v2796_v22  ;;  %143 = vmatmul.f32.vlgmr.msra.gmra.mxu2 %v142_v39  ;;  %402 = vmatpush.msrb.mxu1 %v2832_v48 }
  0x1d   :  { %4280 = vst [vmem:[#allocation31_spill] sm:$0xff] %v2798_v23  ;;  %172 = vmatpush.msra.mxu3 %v171_v35  ;;  %298 = vmatpush.msra.mxu2 %v2827_v43  ;;  %v81_v35 = vld [vmem:[#allocation5 + $0x108] sm:$0xff] }
  0x1e   :  { %4281 = vst [vmem:[#allocation32_spill] sm:$0xff] %v2800_v24  ;;  %174 = vmatmul.f32.vlgmr.msra.gmra.mxu3 %v138_v42  ;;  %372 = vmatpush.msrb.mxu0 %v2841_v52  ;;  %v342_v42 = vand.u32 4294901760, %v341_v53  ;;  %v348_v52 = vand.u32 4294901760, %v347_v56  ;;  %v2913_v46 = vand.u32 4294901760, %v81_v35  ;;  %v79_v56 = vld [vmem:[#allocation5 + $0xf8] sm:$0xff]  ;;  %v3001_v24 = vand.u32 4294901760, %v75_v21 }
  0x1f   :  { %4282 = vst [vmem:[#allocation33_spill] sm:$0xff] %v2802_v25  ;;  %219 = vmatpush.msrb.mxu3 %v134_v36  ;;  %300 = vmatpush.msra.mxu2 %v2829_v44  ;;  %v308_v36 = vsub.f32 %v306_v47, %v307_v51  ;;  %v74_v25 = vld [vmem:[#allocation5 + $0xd0] sm:$0xff] }
  0x20   :  { %4283 = vst [vmem:[#allocation34_spill] sm:$0xff] %v2804_v26  ;;  %375 = vmatpush.msrb.mxu0 %v339_v61  ;;  %404 = vmatpush.msrb.mxu1 %v2844_v55  ;;  %v82_v61 = vld [vmem:[#allocation5 + $0x110] sm:$0xff] }
  0x21   :  { %4284 = vst [vmem:[#allocation35_spill] sm:$0xff] %v2806_v27  ;;  %221 = vmatpush.msrb.mxu3 %v2824_v37  ;;  %302 = vmatpush.msra.mxu2 %v2832_v48  ;;  %v309_v37 = vand.u32 4294901760, %v308_v36  ;;  %v2896_v34 = vand.u32 4294901760, %v82_v61  ;;  %v3015_v27 = vsub.f32 %v75_v21, %v3001_v24 }
  0x22   :  { %4285 = vst [vmem:[#allocation36_spill] sm:$0xff] %v2808_v28  ;;  %378 = vmatpush.msrb.mxu0 %v345_v38  ;;  %408 = vmatmul.f32.vlgmr.msrb.gmra.mxu1 %v307_v51  ;;  %v2928_v51 = vsub.f32 %v81_v35, %v2913_v46  ;;  %v3017_v28 = vand.u32 4294901760, %v74_v25 }
  0x23   :  { %4286 = vst [vmem:[#allocation37_spill] sm:$0xff] %v2810_v29  ;;  %331 = vmatpush.msra.mxu3 %v330_v45  ;;  %304 = vmatpush.msra.mxu2 %v2844_v55  ;;  %v73_v29 = vld [vmem:[#allocation5 + $0xc8] sm:$0xff] }
  0x24   :  { %4287 = vst [vmem:[#allocation38_spill] sm:$0xff] %v2812_v30  ;;  %381 = vmatmul.f32.vlgmr.msrb.gmra.mxu0 %v306_v47  ;;  %200 = vmatmul.f32.vlgmr.msrb.gmra.mxu2 %v2837_v50  ;;  %v85_v50 = vld [vmem:[#allocation5 + $0x128] sm:$0xff]  ;;  %v80_v47 = vld [vmem:[#allocation5 + $0x100] sm:$0xff]  ;;  %v3029_v30 = vand.u32 4294901760, %v3015_v27  ;;  %v3032_v21 = vsub.f32 %v74_v25, %v3017_v28 }
  0x25   :  { %4288 = vst [vmem:[#allocation39_spill] sm:$0xff] %v2814_v31  ;;  %337 = vmatpush.msra.mxu3 %v336_v54  ;;  %427 = vmatpush.msrb.mxu2 %v328_v58  ;;  %v84_v58 = vld [vmem:[#allocation5 + $0x120] sm:$0xff]  ;;  %v2924_v54 = vand.u32 4294901760, %v80_v47  ;;  %v3034_v31 = vand.u32 4294901760, %v73_v29 }
  0x26   :  { %4289 = vst [vmem:[#allocation40_spill] sm:$0xff] %v2819_v32  ;;  %225 = vmatmul.f32.vlgmr.msrb.gmra.mxu3 %v140_v57  ;;  %v2868_v57 = vand.u32 4294901760, %v85_v50  ;;  %v2873_v60 = vand.u32 4294901760, %v84_v58  ;;  %v3045_v25 = vand.u32 4294901760, %v3032_v21 }
  0x27   :  { %343 = vmatpush.msra.mxu3 %v342_v42  ;;  %431 = vmatpush.msrb.mxu2 %v334_v63  ;;  %4298 = vst [vmem:[#allocation49_spill] sm:$0xff] %v2928_v51 }
  0x28   :  { %v2871_v59 = vsub.f32 %v85_v50, %v2868_v57  ;;  %480 = vmatpush.msra.mxu0 %v2868_v57  ;;  %v2943_v50 = vand.u32 4294901760, %v2928_v51  ;;  %4308 = vst [vmem:[#allocation59_spill] sm:$0xff] %v3001_v24 }
  0x29   :  { %349 = vmatpush.msra.mxu3 %v348_v52  ;;  %435 = vmatpush.msrb.mxu2 %v340_v41  ;;  %v2909_v41 = vsub.f32 %v82_v61, %v2896_v34  ;;  %v2938_v52 = vsub.f32 %v80_v47, %v2924_v54  ;;  %v77_v47 = vld [vmem:[#allocation5 + $0xe8] sm:$0xff]  ;;  %4311 = vst [vmem:[#allocation62_spill] sm:$0xff] %v3015_v27 }
  0x2a   :  { %4290 = vst [vmem:[#allocation41_spill] sm:$0xff] %v2871_v59  ;;  %482 = vmatpush.msra.mxu0 %v2873_v60  ;;  %v2972_v32 = vand.u32 4294901760, %v77_v47 }
  0x2b   :  { %458 = vmatpush.msrb.mxu3 %v2827_v43  ;;  %439 = vmatpush.msrb.mxu2 %v346_v49  ;;  %v83_v43 = vld [vmem:[#allocation5 + $0x118] sm:$0xff]  ;;  %4296 = vst [vmem:[#allocation47_spill] sm:$0xff] %v2909_v41  ;;  %v2922_v53 = vand.u32 4294901760, %v2909_v41  ;;  %v2951_v61 = vand.u32 4294901760, %v2938_v52 }
  0x2c   :  { %310 = vmatmul.f32.vlgmr.msra.gmra.mxu2 %v309_v37  ;;  %4299 = vst [vmem:[#allocation50_spill] sm:$0xff] %v2938_v52  ;;  %v2940_v37 = vand.u32 4294901760, %v79_v56 }
  0x2d   :  { %460 = vmatpush.msrb.mxu3 %v2829_v44  ;;  %v2878_v44 = vand.u32 4294901760, %v2871_v59  ;;  %623 = vmatpush.msra.mxu2 %v2871_v59  ;;  %4297 = vst [vmem:[#allocation48_spill] sm:$0xff] %v2922_v53  ;;  %v541_v36 = vsub.f32 %v2909_v41, %v2922_v53 }
  0x2e   :  { %351 = vmatmul.f32.vlgmr.msra.gmra.mxu3 %v305_v33  ;;  %4300 = vst [vmem:[#allocation51_spill] sm:$0xff] %v2943_v50 }
  0x2f   :  { %462 = vmatpush.msrb.mxu3 %v2832_v48  ;;  %4291 = vst [vmem:[#allocation42_spill] sm:$0xff] %v2878_v44  ;;  %v2881_v48 = vsub.f32 %v84_v58, %v2873_v60  ;;  %v523_v62 = vsub.f32 %v2871_v59, %v2878_v44  ;;  %v78_v58 = vld [vmem:[#allocation5 + $0xf0] sm:$0xff] }
  0x30   :  { %4301 = vst [vmem:[#allocation52_spill] sm:$0xff] %v2951_v61  ;;  %v2956_v35 = vand.u32 4294901760, %v78_v58 }
  0x31   :  { %464 = vmatpush.msrb.mxu3 %v2844_v55  ;;  %4292 = vst [vmem:[#allocation43_spill] sm:$0xff] %v2881_v48  ;;  %v2883_v55 = vand.u32 4294901760, %v83_v43  ;;  %v2891_v63 = vand.u32 4294901760, %v2881_v48  ;;  %626 = vmatpush.msra.mxu2 %v2881_v48  ;;  %v2901_v38 = vand.u32 4294901760, %v523_v62  ;;  %v2954_v62 = vsub.f32 %v79_v56, %v2940_v37 }
  0x32   :  { %4312 = vst [vmem:[#allocation63_spill] sm:$0xff] %v3017_v28 }
  0x33   :  { %676 = vmatpush.msra.mxu3 %v2868_v57  ;;  %4293 = vst [vmem:[#allocation44_spill] sm:$0xff] %v2891_v63  ;;  %484 = vmatpush.msra.mxu0 %v2883_v55  ;;  %v529_v39 = vsub.f32 %v2881_v48, %v2891_v63  ;;  %v2967_v56 = vand.u32 4294901760, %v2954_v62 }
  0x34   :  { %441 = vmatmul.f32.vlgmr.msrb.gmra.mxu2 %v305_v33  ;;  %525 = vmatpush.msra.mxu1 %v2901_v38  ;;  %4302 = vst [vmem:[#allocation53_spill] sm:$0xff] %v2954_v62 }
  0x35   :  { %678 = vmatpush.msra.mxu3 %v2873_v60  ;;  %486 = vmatpush.msra.mxu0 %v2896_v34  ;;  %v2917_v49 = vand.u32 4294901760, %v529_v39  ;;  %v547_v39 = vsub.f32 %v2928_v51, %v2943_v50  ;;  %4303 = vst [vmem:[#allocation54_spill] sm:$0xff] %v2967_v56  ;;  %v559_v19 = vsub.f32 %v2954_v62, %v2967_v56 }
  0x36   :  { %466 = vmatmul.f32.vlgmr.msrb.gmra.mxu3 %v305_v33  ;;  %v2894_v33 = vsub.f32 %v83_v43, %v2883_v55  ;;  %v2948_v43 = vand.u32 4294901760, %v541_v36  ;;  %v2970_v36 = vsub.f32 %v78_v58, %v2956_v35  ;;  %v2987_v58 = vsub.f32 %v77_v47, %v2972_v32  ;;  %4315 = vst [vmem:[#allocation66_spill] sm:$0xff] %v3029_v30 }
  0x37   :  { %680 = vmatpush.msra.mxu3 %v2883_v55  ;;  %488 = vmatpush.msra.mxu0 %v2913_v46  ;;  %v2975_v16 = vand.u32 4294901760, %v547_v39  ;;  %v2991_v39 = vand.u32 4294901760, %v76_v17  ;;  %4316 = vst [vmem:[#allocation67_spill] sm:$0xff] %v3032_v21 }
  0x38   :  { %4294 = vst [vmem:[#allocation45_spill] sm:$0xff] %v2894_v33  ;;  %v2906_v40 = vand.u32 4294901760, %v2894_v33  ;;  %629 = vmatpush.msra.mxu2 %v2894_v33  ;;  %531 = vmatpush.msra.mxu1 %v2917_v49  ;;  %v2984_v20 = vand.u32 4294901760, %v2970_v36  ;;  %v2999_v23 = vand.u32 4294901760, %v2987_v58 }
  0x39   :  { %682 = vmatpush.msra.mxu3 %v2896_v34  ;;  %490 = vmatpush.msra.mxu0 %v2924_v54  ;;  %4304 = vst [vmem:[#allocation55_spill] sm:$0xff] %v2970_v36  ;;  %v3007_v47 = vsub.f32 %v76_v17, %v2991_v39 }
  0x3a   :  { %4295 = vst [vmem:[#allocation46_spill] sm:$0xff] %v2906_v40  ;;  %v535_v45 = vsub.f32 %v2894_v33, %v2906_v40  ;;  %632 = vmatpush.msra.mxu2 %v2909_v41  ;;  %v565_v22 = vsub.f32 %v2970_v36, %v2984_v20  ;;  %v571_v26 = vsub.f32 %v2987_v58, %v2999_v23 }
  0x3b   :  { %684 = vmatpush.msra.mxu3 %v2913_v46  ;;  %492 = vmatpush.msra.mxu0 %v2940_v37  ;;  %4305 = vst [vmem:[#allocation56_spill] sm:$0xff] %v2984_v20  ;;  %v3023_v17 = vand.u32 4294901760, %v3007_v47  ;;  %v589_v33 = vsub.f32 %v3032_v21, %v3045_v25 }
  0x3c   :  { %v2933_v42 = vand.u32 4294901760, %v535_v45  ;;  %635 = vmatpush.msra.mxu2 %v2928_v51  ;;  %v553_v45 = vsub.f32 %v2938_v52, %v2951_v61  ;;  %4306 = vst [vmem:[#allocation57_spill] sm:$0xff] %v2987_v58  ;;  %v71_v51 = vld [vmem:[#allocation5 + $0xb8] sm:$0xff] }
  0x3d   :  { %686 = vmatpush.msra.mxu3 %v2924_v54  ;;  %494 = vmatpush.msra.mxu0 %v2956_v35  ;;  %4307 = vst [vmem:[#allocation58_spill] sm:$0xff] %v2999_v23 }
  0x3e   :  { %537 = vmatpush.msra.mxu1 %v2933_v42  ;;  %638 = vmatpush.msra.mxu2 %v2938_v52  ;;  %v2979_v18 = vand.u32 4294901760, %v553_v45  ;;  %v2994_v45 = vand.u32 4294901760, %v559_v19  ;;  %4309 = vst [vmem:[#allocation60_spill] sm:$0xff] %v3007_v47  ;;  %v3010_v19 = vand.u32 4294901760, %v565_v22  ;;  %v3026_v22 = vand.u32 4294901760, %v571_v26 }
  0x3f   :  { %688 = vmatpush.msra.mxu3 %v2940_v37  ;;  %496 = vmatpush.msra.mxu0 %v2972_v32  ;;  %4313 = vst [vmem:[#allocation64_spill] sm:$0xff] %v3023_v17  ;;  %v583_v26 = vsub.f32 %v3015_v27, %v3029_v30 }
  0x40   :  { %543 = vmatpush.msra.mxu1 %v2948_v43  ;;  %641 = vmatpush.msra.mxu2 %v2954_v62  ;;  %4310 = vst [vmem:[#allocation61_spill] sm:$0xff] %v3010_v19  ;;  %v3048_v62 = vsub.f32 %v73_v29, %v3034_v31 }
  0x41   :  { %690 = vmatpush.msra.mxu3 %v2956_v35  ;;  %498 = vmatpush.msra.mxu0 %v2991_v39  ;;  %4314 = vst [vmem:[#allocation65_spill] sm:$0xff] %v3026_v22  ;;  %v3058_v41 = vand.u32 4294901760, %v583_v26  ;;  %v3074_v26 = vand.u32 4294901760, %v589_v33 }
  0x42   :  { %549 = vmatpush.msra.mxu1 %v2975_v16  ;;  %644 = vmatpush.msra.mxu2 %v2970_v36  ;;  %4317 = vst [vmem:[#allocation68_spill] sm:$0xff] %v3034_v31  ;;  %v72_v36 = vld [vmem:[#allocation5 + $0xc0] sm:$0xff]  ;;  %v3063_v29 = vand.u32 4294901760, %v3048_v62 }
  0x43   :  { %692 = vmatpush.msra.mxu3 %v2972_v32  ;;  %500 = vmatpush.msra.mxu0 %v3001_v24  ;;  %4318 = vst [vmem:[#allocation69_spill] sm:$0xff] %v3045_v25  ;;  %v3050_v52 = vand.u32 4294901760, %v72_v36 }
  0x44   :  { %555 = vmatpush.msra.mxu1 %v2979_v18  ;;  %647 = vmatpush.msra.mxu2 %v2987_v58  ;;  %v577_v58 = vsub.f32 %v3007_v47, %v3023_v17  ;;  %4319 = vst [vmem:[#allocation70_spill] sm:$0xff] %v3048_v62  ;;  %v595_v59 = vsub.f32 %v3048_v62, %v3063_v29 }
  0x45   :  { %694 = vmatpush.msra.mxu3 %v2991_v39  ;;  %502 = vmatpush.msra.mxu0 %v3017_v28  ;;  %4320 = vst [vmem:[#allocation71_spill] sm:$0xff] %v3050_v52  ;;  %v3066_v48 = vsub.f32 %v72_v36, %v3050_v52 }
  0x46   :  { %561 = vmatpush.msra.mxu1 %v2994_v45  ;;  %650 = vmatpush.msra.mxu2 %v3007_v47  ;;  %v3055_v47 = vand.u32 4294901760, %v577_v58  ;;  %4322 = vst [vmem:[#allocation73_spill] sm:$0xff] %v3063_v29  ;;  %v3071_v58 = vand.u32 4294901760, %v71_v51  ;;  %v3090_v33 = vand.u32 4294901760, %v595_v59 }
  0x47   :  { %696 = vmatpush.msra.mxu3 %v3001_v24  ;;  %504 = vmatpush.msra.mxu0 %v3034_v31  ;;  %4323 = vst [vmem:[#allocation74_spill] sm:$0xff] %v3066_v48 }
  0x48   :  { %567 = vmatpush.msra.mxu1 %v3010_v19  ;;  %653 = vmatpush.msra.mxu2 %v3015_v27  ;;  %4321 = vst [vmem:[#allocation72_spill] sm:$0xff] %v3055_v47  ;;  %v70_v27 = vld [vmem:[#allocation5 + $0xb0] sm:$0xff] }
  0x49   :  { %698 = vmatpush.msra.mxu3 %v3017_v28  ;;  %4324 = vst [vmem:[#allocation75_spill] sm:$0xff] %v3071_v58  ;;  %506 = vmatpush.msra.mxu0 %v3050_v52  ;;  %v3081_v36 = vand.u32 4294901760, %v70_v27 }
  0x4a   :  { %573 = vmatpush.msra.mxu1 %v3026_v22  ;;  %656 = vmatpush.msra.mxu2 %v3032_v21  ;;  %v3079_v22 = vand.u32 4294901760, %v3066_v48  ;;  %v3087_v21 = vsub.f32 %v71_v51, %v3071_v58  ;;  %4328 = vst [vmem:[#allocation79_spill] sm:$0xff] %v3090_v33 }
  0x4b   :  { %700 = vmatpush.msra.mxu3 %v3034_v31  ;;  %4326 = vst [vmem:[#allocation77_spill] sm:$0xff] %v3081_v36  ;;  %508 = vmatpush.msra.mxu0 %v3071_v58  ;;  %v3095_v19 = vsub.f32 %v70_v27, %v3081_v36 }
  0x4c   :  { %579 = vmatpush.msra.mxu1 %v3055_v47  ;;  %4325 = vst [vmem:[#allocation76_spill] sm:$0xff] %v3079_v22  ;;  %659 = vmatpush.msra.mxu2 %v3048_v62  ;;  %v601_v47 = vsub.f32 %v3066_v48, %v3079_v22  ;;  %v3101_v62 = vand.u32 4294901760, %v3087_v21 }
  0x4d   :  { %702 = vmatpush.msra.mxu3 %v3050_v52  ;;  %4327 = vst [vmem:[#allocation78_spill] sm:$0xff] %v3087_v21  ;;  %510 = vmatpush.msra.mxu0 %v3081_v36  ;;  %v3107_v59 = vand.u32 4294901760, %v3095_v19 }
  0x4e   :  { %585 = vmatpush.msra.mxu1 %v3058_v41  ;;  %4329 = vst [vmem:[#allocation80_spill] sm:$0xff] %v3095_v19  ;;  %662 = vmatpush.msra.mxu2 %v3066_v48  ;;  %v3104_v51 = vand.u32 4294901760, %v601_v47  ;;  %v607_v27 = vsub.f32 %v3087_v21, %v3101_v62 }
  0x4f   :  { %704 = vmatpush.msra.mxu3 %v3071_v58  ;;  %4330 = vst [vmem:[#allocation81_spill] sm:$0xff] %v3101_v62  ;;  %717 = vmatpush.msrb.mxu0 %v2878_v44  ;;  %v613_v48 = vsub.f32 %v3095_v19, %v3107_v59 }
  0x50   :  { %591 = vmatpush.msra.mxu1 %v3074_v26  ;;  %4331 = vst [vmem:[#allocation82_spill] sm:$0xff] %v3104_v51  ;;  %665 = vmatpush.msra.mxu2 %v3087_v21  ;;  %v3120_v47 = vand.u32 4294901760, %v607_v27  ;;  %v110_v21 = vld [vmem:[%s4124_s6] sm:$0x1] }
  0x51   :  { %4332 = vst [vmem:[#allocation83_spill] sm:$0xff] %v3107_v59  ;;  %706 = vmatpush.msra.mxu3 %v3081_v36  ;;  %721 = vmatpush.msrb.mxu0 %v2891_v63  ;;  %v3122_v44 = vand.u32 4294901760, %v613_v48 }
  0x52   :  { %597 = vmatpush.msra.mxu1 %v3090_v33  ;;  %668 = vmatpush.msra.mxu2 %v3095_v19  ;;  %4333 = vst [vmem:[#allocation84_spill] sm:$0xff] %v3120_v47 }
  0x53   :  { %4334 = vst [vmem:[#allocation85_spill] sm:$0xff] %v3122_v44  ;;  %725 = vmatpush.msrb.mxu0 %v2906_v40 }
  0x54   :  { %603 = vmatpush.msra.mxu1 %v3104_v51 }
  0x55   :  { %729 = vmatpush.msrb.mxu0 %v2922_v53 }
  0x56   :  { %609 = vmatpush.msra.mxu1 %v3120_v47 }
  0x57   :  { %733 = vmatpush.msrb.mxu0 %v2943_v50 }
  0x58   :  { %615 = vmatpush.msra.mxu1 %v3122_v44 }
  0x59   :  { %737 = vmatpush.msrb.mxu0 %v2951_v61 }
  0x5a   :  { %784 = vmatpush.msrb.mxu1 %v2868_v57 }
  0x5b   :  { %741 = vmatpush.msrb.mxu0 %v2967_v56 }
  0x5c   :  { %786 = vmatpush.msrb.mxu1 %v2873_v60 }
  0x5d   :  { %745 = vmatpush.msrb.mxu0 %v2984_v20 }
  0x5e   :  { %788 = vmatpush.msrb.mxu1 %v2883_v55 }
  0x5f   :  { %749 = vmatpush.msrb.mxu0 %v2999_v23  ;;  %v88_v23 = vld [vmem:[#allocation5 + $0x140] sm:$0xff] }
  0x60   :  { %790 = vmatpush.msrb.mxu1 %v2896_v34  ;;  %v3223_v20 = vand.u32 4294901760, %v88_v23 }
  0x61   :  { %753 = vmatpush.msrb.mxu0 %v3023_v17 }
  0x62   :  { %792 = vmatpush.msrb.mxu1 %v2913_v46  ;;  %4352 = vst [vmem:[#allocation103_spill] sm:$0xff] %v3223_v20 }
  0x63   :  { %757 = vmatpush.msrb.mxu0 %v3029_v30  ;;  %v89_v30 = vld [vmem:[#allocation5 + $0x148] sm:$0xff] }
  0x64   :  { %794 = vmatpush.msrb.mxu1 %v2924_v54 }
  0x65   :  { %761 = vmatpush.msrb.mxu0 %v3045_v25 }
  0x66   :  { %796 = vmatpush.msrb.mxu1 %v2940_v37 }
  0x67   :  { %765 = vmatpush.msrb.mxu0 %v3063_v29 }
  0x68   :  { %798 = vmatpush.msrb.mxu1 %v2956_v35 }
  0x69   :  { %769 = vmatpush.msrb.mxu0 %v3079_v22 }
  0x6a   :  { %800 = vmatpush.msrb.mxu1 %v2972_v32 }
  0x6b   :  { %773 = vmatpush.msrb.mxu0 %v3101_v62 }
  0x6c   :  { %802 = vmatpush.msrb.mxu1 %v2991_v39 }
  0x6d   :  { %777 = vmatpush.msrb.mxu0 %v3107_v59 }
  0x6e   :  { %804 = vmatpush.msrb.mxu1 %v3001_v24 }
  0x70   :  { %806 = vmatpush.msrb.mxu1 %v3017_v28 }
  0x72   :  { %808 = vmatpush.msrb.mxu1 %v3034_v31 }
  0x74   :  { %810 = vmatpush.msrb.mxu1 %v3050_v52 }
  0x76   :  { %812 = vmatpush.msrb.mxu1 %v3071_v58 }
  0x78   :  { %814 = vmatpush.msrb.mxu1 %v3081_v36 }
  0x97   :  { %v253_v40 = vpop.f32.mrf.mxu0 }
  0x9f   :  { %v144_v33 = vpop.f32.mrf.mxu2 }
  0xa0   :  { %v145_v19 = vadd.f32 %v144_v33, %v110_v21  ;;  %v276_v33 = vpop.f32.mrf.mxu1 }
  0xa1   :  { %v175_v63 = vpop.f32.mrf.mxu3 }
  0xa2   :  { %v176_v48 = vadd.f32 %v175_v63, %v145_v19  ;;  %v113_v63 = vld [vmem:[%s4124_s6 + $0x3] sm:$0x1] }
  0xa7   :  { %v201_v27 = vpop.f32.mrf.mxu2 }
  0xa8   :  { %v202_v53 = vadd.f32 %v201_v27, %v176_v48 }
  0xa9   :  { %v226_v21 = vpop.f32.mrf.mxu3 }
  0xaa   :  { %v227_v44 = vadd.f32 %v226_v21, %v202_v53 }
  0xac   :  { %v254_v61 = vadd.f32 %v253_v40, %v227_v44  ;;  %v382_v40 = vpop.f32.mrf.mxu0 }
  0xae   :  { %v277_v19 = vadd.f32 %v276_v33, %v254_v61  ;;  %v409_v61 = vpop.f32.mrf.mxu1 }
  0xaf   :  { %v311_v48 = vpop.f32.mrf.mxu2 }
  0xb0   :  { %v3148_v53 = vadd.f32 %v277_v19, %v113_v63  ;;  %v312_v27 = vadd.f32 %v311_v48, %v277_v19 }
  0xb1   :  { %v352_v44 = vpop.f32.mrf.mxu3 }
  0xb2   :  { %4335 = vst [vmem:[#allocation86_spill] sm:$0xff] %v3148_v53  ;;  %v353_v21 = vadd.f32 %v352_v44, %v312_v27 }
  0xb4   :  { %v383_v33 = vadd.f32 %v382_v40, %v353_v21 }
  0xb6   :  { %v410_v63 = vadd.f32 %v409_v61, %v383_v33 }
  0xb7   :  { %v442_v19 = vpop.f32.mrf.mxu2 }
  0xb8   :  { %v443_v48 = vadd.f32 %v442_v19, %v410_v63 }
  0xb9   :  { %v467_v27 = vpop.f32.mrf.mxu3 }
  0xba   :  { %v468_v44 = vadd.f32 %v467_v27, %v443_v48 }
  0xbc   :  { %v471_v40 = vand.u32 2147483647, %v468_v44  ;;  %v470_v53 = vmax.f32 %v468_v44, 0.0 }
  0xbe   :  { %v472_v21 = vsub.f32 0.0, %v471_v40 }
  0xc0   :  { %v473_v61 = vmul.f32 1.442695, %v472_v21  ;;  %v93_v21 = vld [vmem:[#allocation5 + $0x168] sm:$0xff] }
  0xc2   :  { %2632 = vpow2.f32 %v473_v61  ;;  %v3164_v61 = vand.u32 4294901760, %v93_v21 }
  0xc4   :  { %4336 = vst [vmem:[#allocation87_spill] sm:$0xff] %v3164_v61  ;;  %833 = vmatpush.msrb.mxu2 %v3164_v61 }
  0xc8   :  { %v2633_v33 = vpop.eup %2632 }
  0xc9   :  { %v475_v63 = vadd.f32 1.0, %v2633_v33  ;;  %v92_v33 = vld [vmem:[#allocation5 + $0x160] sm:$0xff] }
  0xca   :  { %v3169_v44 = vand.u32 4294901760, %v92_v33 }
  0xcb   :  { %2634 = vlog2.f32 %v475_v63  ;;  %v3167_v63 = vsub.f32 %v93_v21, %v3164_v61 }
  0xcc   :  { %4338 = vst [vmem:[#allocation89_spill] sm:$0xff] %v3169_v44  ;;  %835 = vmatpush.msrb.mxu2 %v3169_v44 }
  0xcd   :  { %4337 = vst [vmem:[#allocation88_spill] sm:$0xff] %v3167_v63 }
  0xd1   :  { %v2635_v19 = vpop.eup %2634 }
  0xd2   :  { %v477_v59 = vmul.f32 0.6931472, %v2635_v19 }
  0xd4   :  { %v478_v62 = vadd.f32 %v477_v59, %v470_v53 }
  0xd6   :  { %v511_v48 = vand.u32 4294901760, %v478_v62 }
  0xd8   :  { %v512_v27 = vsub.f32 %v478_v62, %v511_v48  ;;  %617 = vmatmul.f32.vlgmr.msra.gmra.mxu1 %v511_v48  ;;  %v91_v62 = vld [vmem:[#allocation5 + $0x158] sm:$0xff] }
  0xd9   :  { %1041 = vmatpush.msra.mxu1 %v3164_v61  ;;  %v3179_v59 = vand.u32 4294901760, %v91_v62 }
  0xda   :  { %671 = vmatmul.f32.vlgmr.msra.gmra.mxu2 %v512_v27  ;;  %v513_v22 = vand.u32 4294901760, %v512_v27 }
  0xdb   :  { %4341 = vst [vmem:[#allocation92_spill] sm:$0xff] %v3179_v59  ;;  %1043 = vmatpush.msra.mxu1 %v3169_v44  ;;  %837 = vmatpush.msrb.mxu2 %v3179_v59 }
  0xdc   :  { %710 = vmatmul.f32.vlgmr.msra.gmra.mxu3 %v513_v22  ;;  %v514_v40 = vsub.f32 %v512_v27, %v513_v22  ;;  %v3174_v22 = vand.u32 4294901760, %v3167_v63  ;;  %v90_v27 = vld [vmem:[#allocation5 + $0x150] sm:$0xff] }
  0xdd   :  { %1045 = vmatpush.msra.mxu1 %v3179_v59 }
  0xde   :  { %v515_v29 = vand.u32 4294901760, %v514_v40  ;;  %4339 = vst [vmem:[#allocation90_spill] sm:$0xff] %v3174_v22  ;;  %v868_v53 = vsub.f32 %v3167_v63, %v3174_v22  ;;  %v3193_v40 = vand.u32 4294901760, %v90_v27 }
  0xe0   :  { %516 = vmatmul.f32.vlgmr.msra.gmra.mxu0 %v515_v29  ;;  %816 = vmatmul.f32.vlgmr.msrb.gmra.mxu1 %v511_v48  ;;  %v3177_v29 = vsub.f32 %v92_v33, %v3169_v44  ;;  %4344 = vst [vmem:[#allocation95_spill] sm:$0xff] %v3193_v40  ;;  %v3196_v21 = vand.u32 4294901760, %v868_v53 }
  0xe1   :  { %998 = vmatpush.msra.mxu0 %v3174_v22  ;;  %v3207_v22 = vand.u32 4294901760, %v89_v30  ;;  %1047 = vmatpush.msra.mxu1 %v3193_v40 }
  0xe2   :  { %4340 = vst [vmem:[#allocation91_spill] sm:$0xff] %v3177_v29  ;;  %v3186_v19 = vand.u32 4294901760, %v3177_v29  ;;  %839 = vmatpush.msrb.mxu2 %v3193_v40  ;;  %870 = vmatpush.msrb.mxu3 %v3196_v21 }
  0xe3   :  { %4345 = vst [vmem:[#allocation96_spill] sm:$0xff] %v3196_v21  ;;  %1049 = vmatpush.msra.mxu1 %v3207_v22  ;;  %v87_v21 = vld [vmem:[#allocation5 + $0x138] sm:$0xff] }
  0xe4   :  { %4342 = vst [vmem:[#allocation93_spill] sm:$0xff] %v3186_v19  ;;  %v874_v33 = vsub.f32 %v3177_v29, %v3186_v19  ;;  %1002 = vmatpush.msra.mxu0 %v3186_v19  ;;  %841 = vmatpush.msrb.mxu2 %v3207_v22  ;;  %v3238_v50 = vand.u32 4294901760, %v87_v21 }
  0xe5   :  { %4348 = vst [vmem:[#allocation99_spill] sm:$0xff] %v3207_v22  ;;  %1051 = vmatpush.msra.mxu1 %v3223_v20 }
  0xe6   :  { %v3212_v53 = vand.u32 4294901760, %v874_v33  ;;  %4356 = vst [vmem:[#allocation107_spill] sm:$0xff] %v3238_v50  ;;  %843 = vmatpush.msrb.mxu2 %v3223_v20 }
  0xe7   :  { %1053 = vmatpush.msra.mxu1 %v3238_v50 }
  0xe8   :  { %779 = vmatmul.f32.vlgmr.msrb.gmra.mxu0 %v511_v48  ;;  %v3189_v48 = vsub.f32 %v91_v62, %v3179_v59  ;;  %v3205_v62 = vsub.f32 %v90_v27, %v3193_v40  ;;  %4349 = vst [vmem:[#allocation100_spill] sm:$0xff] %v3212_v53  ;;  %v3221_v27 = vsub.f32 %v89_v30, %v3207_v22 }
  0xe9   :  { %876 = vmatpush.msrb.mxu3 %v3212_v53  ;;  %v3236_v30 = vsub.f32 %v88_v23, %v3223_v20  ;;  %v3252_v23 = vsub.f32 %v87_v21, %v3238_v50  ;;  %845 = vmatpush.msrb.mxu2 %v3238_v50 }
  0xea   :  { %4343 = vst [vmem:[#allocation94_spill] sm:$0xff] %v3189_v48  ;;  %v3201_v25 = vand.u32 4294901760, %v3189_v48  ;;  %v3218_v19 = vand.u32 4294901760, %v3205_v62  ;;  %v3233_v56 = vand.u32 4294901760, %v3221_v27 }
  0xeb   :  { %4347 = vst [vmem:[#allocation98_spill] sm:$0xff] %v3205_v62  ;;  %v3249_v58 = vand.u32 4294901760, %v3236_v30  ;;  %v3265_v52 = vand.u32 4294901760, %v3252_v23 }
  0xec   :  { %4346 = vst [vmem:[#allocation97_spill] sm:$0xff] %v3201_v25  ;;  %v880_v17 = vsub.f32 %v3189_v48, %v3201_v25  ;;  %1006 = vmatpush.msra.mxu0 %v3201_v25  ;;  %v886_v25 = vsub.f32 %v3205_v62, %v3218_v19  ;;  %v892_v36 = vsub.f32 %v3221_v27, %v3233_v56 }
  0xed   :  { %4350 = vst [vmem:[#allocation101_spill] sm:$0xff] %v3218_v19 }
  0xee   :  { %4351 = vst [vmem:[#allocation102_spill] sm:$0xff] %v3221_v27  ;;  %v3228_v33 = vand.u32 4294901760, %v880_v17  ;;  %1010 = vmatpush.msra.mxu0 %v3218_v19  ;;  %v86_v17 = vld [vmem:[#allocation5 + $0x130] sm:$0xff]  ;;  %v3244_v53 = vand.u32 4294901760, %v886_v25  ;;  %v3260_v25 = vand.u32 4294901760, %v892_v36  ;;  %v904_v36 = vsub.f32 %v3252_v23, %v3265_v52 }
  0xef   :  { %4354 = vst [vmem:[#allocation105_spill] sm:$0xff] %v3233_v56  ;;  %v3256_v19 = vand.u32 4294901760, %v86_v17 }
  0xf0   :  { %4353 = vst [vmem:[#allocation104_spill] sm:$0xff] %v3228_v33  ;;  %882 = vmatpush.msrb.mxu3 %v3228_v33  ;;  %1014 = vmatpush.msra.mxu0 %v3233_v56  ;;  %v898_v33 = vsub.f32 %v3236_v30, %v3249_v58 }
  0xf1   :  { %4355 = vst [vmem:[#allocation106_spill] sm:$0xff] %v3236_v30  ;;  %v3269_v21 = vsub.f32 %v86_v17, %v3256_v19  ;;  %1055 = vmatpush.msra.mxu1 %v3256_v19  ;;  %847 = vmatpush.msrb.mxu2 %v3256_v19  ;;  %v3284_v17 = vand.u32 4294901760, %v904_v36 }
  0xf2   :  { %4357 = vst [vmem:[#allocation108_spill] sm:$0xff] %v3244_v53  ;;  %888 = vmatpush.msrb.mxu3 %v3244_v53  ;;  %1018 = vmatpush.msra.mxu0 %v3249_v58  ;;  %v3274_v56 = vand.u32 4294901760, %v898_v33 }
  0xf3   :  { %4358 = vst [vmem:[#allocation109_spill] sm:$0xff] %v3249_v58  ;;  %v3280_v53 = vand.u32 4294901760, %v3269_v21  ;;  %928 = vmatpush.msra.mxu2 %v3167_v63 }
  0xf4   :  { %4359 = vst [vmem:[#allocation110_spill] sm:$0xff] %v3252_v23  ;;  %894 = vmatpush.msrb.mxu3 %v3260_v25  ;;  %1022 = vmatpush.msra.mxu0 %v3265_v52 }
  0xf5   :  { %4360 = vst [vmem:[#allocation111_spill] sm:$0xff] %v3256_v19  ;;  %v910_v58 = vsub.f32 %v3269_v21, %v3280_v53  ;;  %931 = vmatpush.msra.mxu2 %v3177_v29 }
  0xf6   :  { %4361 = vst [vmem:[#allocation112_spill] sm:$0xff] %v3260_v25  ;;  %900 = vmatpush.msrb.mxu3 %v3274_v56  ;;  %1026 = vmatpush.msra.mxu0 %v3280_v53 }
  0xf7   :  { %4362 = vst [vmem:[#allocation113_spill] sm:$0xff] %v3265_v52  ;;  %v3291_v33 = vand.u32 4294901760, %v910_v58  ;;  %934 = vmatpush.msra.mxu2 %v3189_v48  ;;  %v3311_v58 = vld [vmem:[%s4124_s6 + $0x1] sm:$0x1] }
  0xf8   :  { %4363 = vst [vmem:[#allocation114_spill] sm:$0xff] %v3269_v21  ;;  %906 = vmatpush.msrb.mxu3 %v3284_v17 }
  0xf9   :  { %4364 = vst [vmem:[#allocation115_spill] sm:$0xff] %v3274_v56  ;;  %937 = vmatpush.msra.mxu2 %v3205_v62 }
  0xfa   :  { %4365 = vst [vmem:[#allocation116_spill] sm:$0xff] %v3280_v53  ;;  %912 = vmatpush.msrb.mxu3 %v3291_v33 }
  0xfb   :  { %4366 = vst [vmem:[#allocation117_spill] sm:$0xff] %v3284_v17  ;;  %940 = vmatpush.msra.mxu2 %v3221_v27 }
  0xfc   :  { %4367 = vst [vmem:[#allocation118_spill] sm:$0xff] %v3291_v33  ;;  %965 = vmatpush.msra.mxu3 %v3164_v61 }
  0xfd   :  { %943 = vmatpush.msra.mxu2 %v3236_v30  ;;  %4368 = vst [vmem:[#allocation119_spill] sm:$0xff] %v3311_v58 }
  0xfe   :  { %967 = vmatpush.msra.mxu3 %v3169_v44 }
  0xff   :  { %946 = vmatpush.msra.mxu2 %v3252_v23 }
 0x100   :  { %969 = vmatpush.msra.mxu3 %v3179_v59 }
 0x101   :  { %949 = vmatpush.msra.mxu2 %v3269_v21 }
 0x102   :  { %971 = vmatpush.msra.mxu3 %v3193_v40 }
 0x104   :  { %973 = vmatpush.msra.mxu3 %v3207_v22 }
 0x106   :  { %975 = vmatpush.msra.mxu3 %v3223_v20 }
 0x108   :  { %977 = vmatpush.msra.mxu3 %v3238_v50 }
 0x10a   :  { %979 = vmatpush.msra.mxu3 %v3256_v19 }
 0x155   :  { %v618_v36 = vpop.f32.mrf.mxu1 }
 0x15d   :  { %v517_v53 = vpop.f32.mrf.mxu0  ;;  %v672_v30 = vpop.f32.mrf.mxu2 }
 0x15e   :  { %v518_v23 = vadd.f32 %v517_v53, %v3311_v58  ;;  %v817_v63 = vpop.f32.mrf.mxu1 }
 0x15f   :  { %v711_v27 = vpop.f32.mrf.mxu3 }
 0x160   :  { %v619_v52 = vadd.f32 %v618_v36, %v518_v23 }
 0x162   :  { %v673_v21 = vadd.f32 %v672_v30, %v619_v52 }
 0x164   :  { %v712_v62 = vadd.f32 %v711_v27, %v673_v21 }
 0x165   :  { %v780_v48 = vpop.f32.mrf.mxu0 }
 0x166   :  { %v781_v29 = vadd.f32 %v780_v48, %v712_v62  ;;  %v3318_v48 = vld [vmem:[%s4124_s6 + $0x2] sm:$0x1] }
 0x167   :  { %4369 = vst [vmem:[#allocation120_spill] sm:$0xff] %v3318_v48 }
 0x168   :  { %v818_v33 = vadd.f32 %v817_v63, %v781_v29  }
 0x16a   :  { %v822_v17 = vsel %vm820_vm2, %v818_v33, 0 }
 0x16b   :  { %v848_v56 = vand.u32 4294901760, %v822_v17 }
 0x16d   :  { %v849_v25 = vsub.f32 %v822_v17, %v848_v56  ;;  %914 = vmatmul.f32.vlgmr.msrb.gmra.mxu3 %v848_v56  ;;  %1028 = vmatmul.f32.vlgmr.msra.gmra.mxu0 %v848_v56 }
 0x16e   :  { %1057 = vmatmul.f32.vlgmr.msra.gmra.mxu1 %v848_v56 }
 0x16f   :  { %v850_v19 = vand.u32 4294901760, %v849_v25 }
 0x171   :  { %v851_v50 = vsub.f32 %v849_v25, %v850_v19 }
 0x173   :  { %v852_v53 = vand.u32 4294901760, %v851_v50 }
 0x175   :  { %853 = vmatmul.f32.vlgmr.msrb.gmra.mxu2 %v852_v53  ;;  %983 = vmatmul.f32.vlgmr.msra.gmra.mxu3 %v850_v19 }
 0x17d   :  { %952 = vmatmul.f32.vlgmr.msra.gmra.mxu2 %v849_v25 }
 0x1ea   :  { %v1029_v21 = vpop.f32.mrf.mxu0 }
 0x1eb   :  { %v1058_v50 = vpop.f32.mrf.mxu1 }
 0x1f0   :  { %v915_v52 = vpop.f32.mrf.mxu3 }
 0x1f8   :  { %v854_v63 = vpop.f32.mrf.mxu2  ;;  %v984_v23 = vpop.f32.mrf.mxu3 }
 0x1f9   :  { %v855_v29 = vadd.f32 %v854_v63, %v3318_v48 }
 0x1fb   :  { %v916_v62 = vadd.f32 %v915_v52, %v855_v29 }
 0x200   :  { %v953_v27 = vpop.f32.mrf.mxu2 }
 0x201   :  { %v954_v30 = vadd.f32 %v953_v27, %v916_v62 }
 0x203   :  { %v985_v56 = vadd.f32 %v984_v23, %v954_v30 }
 0x205   :  { %v1030_v17 = vadd.f32 %v1029_v21, %v985_v56 }
 0x207   :  { %v1059_v36 = vadd.f32 %v1058_v50, %v1030_v17  ;;  %2582 = sbr.rel (%p2589_p0) target bundleno = 1061 (0x425), region = 53 }
 0x209   :  { %v1061_v19 = vmax.f32 %v1059_v36, 0.0  }
 0x20b   :  { %v4370_v25 = vmov %v1061_v19 }
 0x20c LB: > { %v4371_v0 = vld [vmem:[#allocation8_spill] sm:$0xff]  ;;  %v4372_v1 = vld [vmem:[#allocation9_spill] sm:$0xff]  ;;  %v4373_v2 = vld [vmem:[#allocation10_spill] sm:$0xff]  ;;  %s1065_s21 = sadd.s32 1, %s2690_s21   ;;  %s2690_s21 = sphi %s3330_s21, %s1065_s21   ;;  %v2686_v19 = vphi %v1061_v19, %v4497_v19  }
 0x20d   : > { %v4374_v3 = vld [vmem:[#allocation11_spill] sm:$0xff]  ;;  %v4375_v4 = vld [vmem:[#allocation12_spill] sm:$0xff]  ;;  %v4376_v5 = vld [vmem:[#allocation13_spill] sm:$0xff]  ;;  %v3473_v31 = vand.u32 4294901760, %v4373_v2  ;;  %p1064_p1 = scmp.ge.s32.totalorder %s1065_s21, %s4120_s2 }
 0x20e   : > { %v4377_v6 = vld [vmem:[#allocation14_spill] sm:$0xff]  ;;  %v4378_v7 = vld [vmem:[#allocation15_spill] sm:$0xff]  ;;  %v4379_v8 = vld [vmem:[#allocation16_spill] sm:$0xff]  ;;  %v3453_v59 = vand.u32 4294901760, %v4375_v4 }
 0x20f   : > { %v4380_v9 = vld [vmem:[#allocation17_spill] sm:$0xff]  ;;  %v4381_v15 = vld [vmem:[#allocation23_spill] sm:$0xff]  ;;  %v4382_v14 = vld [vmem:[#allocation22_spill] sm:$0xff]  ;;  %v3385_v36 = vand.u32 4294901760, %v4379_v8  ;;  %v3411_v48 = vand.u32 4294901760, %v4378_v7  ;;  %4392 = vst [vmem:[#allocation121_spill] sm:$0xff] %v3473_v31  ;;  %v3499_v47 = vsub.f32 %v4373_v2, %v3473_v31 }
 0x210   : > { %v4383_v10 = vld [vmem:[#allocation18_spill] sm:$0xff]  ;;  %v4384_v11 = vld [vmem:[#allocation19_spill] sm:$0xff]  ;;  %v4385_v13 = vld [vmem:[#allocation21_spill] sm:$0xff]  ;;  %v3339_v53 = vand.u32 4294901760, %v4381_v15  ;;  %v3342_v52 = vand.u32 4294901760, %v4382_v14  ;;  %v3357_v27 = vand.u32 4294901760, %v4380_v9 }
 0x211   : > { %v4386_v12 = vld [vmem:[#allocation20_spill] sm:$0xff]  ;;  %v3345_v63 = vand.u32 4294901760, %v4385_v13  ;;  %v3351_v29 = vand.u32 4294901760, %v4384_v11  ;;  %v3354_v62 = vand.u32 4294901760, %v4383_v10 }
 0x212   : > { %v3348_v33 = vand.u32 4294901760, %v4386_v12  ;;  %1071 = vmatpush.msra.mxu0 %v3339_v53  ;;  %v3362_v30 = vsub.f32 %v4381_v15, %v3339_v53  ;;  %v3366_v23 = vsub.f32 %v4382_v14, %v3342_v52  ;;  %1267 = vmatpush.msra.mxu3 %v3339_v53  ;;  %v3397_v14 = vsub.f32 %v4380_v9, %v3357_v27 }
 0x213   : > { %v3370_v56 = vsub.f32 %v4385_v13, %v3345_v63  ;;  %v3378_v17 = vsub.f32 %v4384_v11, %v3351_v29  ;;  %v3382_v50 = vsub.f32 %v4383_v10, %v3354_v62  ;;  %v3415_v9 = vsub.f32 %v4379_v8, %v3385_v36 }
 0x214   : > { %v3374_v21 = vsub.f32 %v4386_v12, %v3348_v33  ;;  %1073 = vmatpush.msra.mxu0 %v3342_v52  ;;  %v4221_v25 = vand.u32 4294901760, %v3362_v30  ;;  %v4223_v12 = vand.u32 4294901760, %v3366_v23  ;;  %1214 = vmatpush.msra.mxu2 %v3362_v30 }
 0x215   : > { %v4226_v13 = vand.u32 4294901760, %v3370_v56  ;;  %1269 = vmatpush.msra.mxu3 %v3342_v52  ;;  %v4388_v22 = vand.u32 4294901760, %v3378_v17  ;;  %v4391_v61 = vand.u32 4294901760, %v3415_v9 }
 0x216   : > { %v1114_v15 = vsub.f32 %v3362_v30, %v4221_v25  ;;  %1075 = vmatpush.msra.mxu0 %v3345_v63  ;;  %v1120_v11 = vsub.f32 %v3366_v23, %v4223_v12  ;;  %1217 = vmatpush.msra.mxu2 %v3366_v23  ;;  %v4387_v12 = vand.u32 4294901760, %v3374_v21 }
 0x217   : > { %v1126_v10 = vsub.f32 %v3370_v56, %v4226_v13  ;;  %1271 = vmatpush.msra.mxu3 %v3345_v63  ;;  %v1138_v40 = vsub.f32 %v3378_v17, %v4388_v22  ;;  %v3439_v13 = vand.u32 4294901760, %v4376_v5  ;;  %v4390_v22 = vand.u32 4294901760, %v3397_v14 }
 0x218   : > { %v1115_v25 = vand.u32 4294901760, %v1114_v15  ;;  %v1121_v58 = vand.u32 4294901760, %v1120_v11  ;;  %1077 = vmatpush.msra.mxu0 %v3348_v33  ;;  %v1132_v20 = vsub.f32 %v3374_v21, %v4387_v12  ;;  %1220 = vmatpush.msra.mxu2 %v3370_v56  ;;  %v3432_v15 = vand.u32 4294901760, %v4377_v6 }
 0x219   : > { %1273 = vmatpush.msra.mxu3 %v3348_v33  ;;  %v1127_v11 = vand.u32 4294901760, %v1126_v10  ;;  %v3436_v12 = vsub.f32 %v4378_v7, %v3411_v48  ;;  %v1150_v44 = vsub.f32 %v3397_v14, %v4390_v22  ;;  %v1156_v22 = vsub.f32 %v3415_v9, %v4391_v61 }
 0x21a   : > { %1116 = vmatpush.msra.mxu1 %v1115_v25  ;;  %1079 = vmatpush.msra.mxu0 %v3351_v29  ;;  %v1133_v10 = vand.u32 4294901760, %v1132_v20  ;;  %v4389_v25 = vand.u32 4294901760, %v3382_v50  ;;  %v3450_v7 = vsub.f32 %v4377_v6, %v3432_v15  ;;  %v1139_v20 = vand.u32 4294901760, %v1138_v40 }
 0x21b   : > { %1223 = vmatpush.msra.mxu2 %v3374_v21  ;;  %1275 = vmatpush.msra.mxu3 %v3351_v29  ;;  %v3467_v6 = vand.u32 4294901760, %v4374_v3  ;;  %v3484_v61 = vand.u32 4294901760, %v4372_v1 }
 0x21c   : > { %1122 = vmatpush.msra.mxu1 %v1121_v58  ;;  %1081 = vmatpush.msra.mxu0 %v3354_v62  ;;  %v1144_v8 = vsub.f32 %v3382_v50, %v4389_v25  ;;  %v3464_v25 = vsub.f32 %v4376_v5, %v3439_v13  ;;  %v3481_v58 = vsub.f32 %v4375_v4, %v3453_v59  ;;  %v1151_v5 = vand.u32 4294901760, %v1150_v44 }
 0x21d   : > { %1226 = vmatpush.msra.mxu2 %v3378_v17  ;;  %1277 = vmatpush.msra.mxu3 %v3354_v62  ;;  %4393 = vst [vmem:[#allocation122_spill] sm:$0xff] %v3484_v61  ;;  %v3495_v4 = vsub.f32 %v4374_v3, %v3467_v6  ;;  %v1157_v44 = vand.u32 4294901760, %v1156_v22  ;;  %v3509_v3 = vand.u32 4294901760, %v4371_v0  ;;  %v3514_v22 = vand.u32 4294901760, %v2686_v19 }
 0x21e   : > { %1128 = vmatpush.msra.mxu1 %v1127_v11  ;;  %1083 = vmatpush.msra.mxu0 %v3357_v27  ;;  %v1145_v40 = vand.u32 4294901760, %v1144_v8  ;;  %v4394_v8 = vand.u32 4294901760, %v3436_v12  ;;  %v4396_v2 = vand.u32 4294901760, %v3464_v25  ;;  %v3523_v28 = vsub.f32 %v4372_v1, %v3484_v61 }
 0x21f   : > { %1229 = vmatpush.msra.mxu2 %v3382_v50  ;;  %1279 = vmatpush.msra.mxu3 %v3357_v27  ;;  %v4397_v51 = vand.u32 4294901760, %v3481_v58  ;;  %v3536_v1 = vsub.f32 %v4371_v0, %v3509_v3 }
 0x220   : > { %1134 = vmatpush.msra.mxu1 %v1133_v10  ;;  %1085 = vmatpush.msra.mxu0 %v3385_v36  ;;  %v1162_v10 = vsub.f32 %v3436_v12, %v4394_v8 }
 0x221   : > { %1232 = vmatpush.msra.mxu2 %v3397_v14  ;;  %1281 = vmatpush.msra.mxu3 %v3385_v36  ;;  %v1203_v0 = vand.u32 4294901760, %v3536_v1 }
 0x222   : > { %1140 = vmatpush.msra.mxu1 %v1139_v20  ;;  %1087 = vmatpush.msra.mxu0 %v3411_v48  ;;  %v4395_v20 = vand.u32 4294901760, %v3450_v7 }
 0x223   : > { %1235 = vmatpush.msra.mxu2 %v3415_v9  ;;  %1283 = vmatpush.msra.mxu3 %v3411_v48 }
 0x224   : > { %1146 = vmatpush.msra.mxu1 %v1145_v40  ;;  %1089 = vmatpush.msra.mxu0 %v3432_v15  ;;  %v1168_v8 = vsub.f32 %v3450_v7, %v4395_v20  ;;  %v1163_v40 = vand.u32 4294901760, %v1162_v10  ;;  %v1174_v20 = vsub.f32 %v3464_v25, %v4396_v2  ;;  %v1180_v2 = vsub.f32 %v3481_v58, %v4397_v51 }
 0x225   : > { %1238 = vmatpush.msra.mxu2 %v3436_v12  ;;  %1285 = vmatpush.msra.mxu3 %v3432_v15  ;;  %v4254_v51 = vand.u32 4294901760, %v3523_v28 }
 0x226   : > { %1152 = vmatpush.msra.mxu1 %v1151_v5  ;;  %1091 = vmatpush.msra.mxu0 %v3439_v13  ;;  %v1103_v5 = vsub.f32 %v2686_v19, %v3514_v22  ;;  %v1169_v10 = vand.u32 4294901760, %v1168_v8  ;;  %v1175_v19 = vand.u32 4294901760, %v1174_v20  ;;  %v1181_v11 = vand.u32 4294901760, %v1180_v2 }
 0x227   : > { %1241 = vmatpush.msra.mxu2 %v3450_v7  ;;  %1287 = vmatpush.msra.mxu3 %v3439_v13 }
 0x228   : > { %1158 = vmatpush.msra.mxu1 %v1157_v44  ;;  %1093 = vmatpush.msra.mxu0 %v3453_v59  ;;  %v4398_v44 = vand.u32 4294901760, %v3495_v4  ;;  %v1104_v24 = vand.u32 4294901760, %v1103_v5 }
 0x229   : > { %1244 = vmatpush.msra.mxu2 %v3464_v25  ;;  %1289 = vmatpush.msra.mxu3 %v3453_v59 }
 0x22a   : > { %1164 = vmatpush.msra.mxu1 %v1163_v40  ;;  %1095 = vmatpush.msra.mxu0 %v3467_v6  ;;  %v1186_v8 = vsub.f32 %v3495_v4, %v4398_v44  ;;  %v4399_v40 = vand.u32 4294901760, %v3499_v47  ;;  %v1105_v2 = vsub.f32 %v1103_v5, %v1104_v24 }
 0x22b   : > { %1247 = vmatpush.msra.mxu2 %v3481_v58  ;;  %1291 = vmatpush.msra.mxu3 %v3467_v6 }
 0x22c   : > { %1170 = vmatpush.msra.mxu1 %v1169_v10  ;;  %1097 = vmatpush.msra.mxu0 %v3473_v31  ;;  %v1192_v20 = vsub.f32 %v3499_v47, %v4399_v40  ;;  %v1187_v44 = vand.u32 4294901760, %v1186_v8  ;;  %v1198_v10 = vsub.f32 %v3523_v28, %v4254_v51  ;;  %v4400_v8 = vand.u32 4294901760, %v3362_v30 }
 0x22d   : > { %1250 = vmatpush.msra.mxu2 %v3495_v4  ;;  %1293 = vmatpush.msra.mxu3 %v3473_v31  ;;  %v1106_v31 = vand.u32 4294901760, %v1105_v2  ;;  %v4403_v30 = vand.u32 4294901760, %v3374_v21  ;;  %v4423_v21 = vld [vmem:[#allocation121_spill] sm:$0xff]  ;;  %v4442_v2 = vld [vmem:[#allocation60_spill] sm:$0xff] }
 0x22e   : > { %1176 = vmatpush.msra.mxu1 %v1175_v19  ;;  %1099 = vmatpush.msra.mxu0 %v3484_v61  ;;  %v1193_v40 = vand.u32 4294901760, %v1192_v20  ;;  %v1204_v19 = vsub.f32 %v3536_v1, %v1203_v0  ;;  %v1199_v51 = vand.u32 4294901760, %v1198_v10  ;;  %v4402_v20 = vand.u32 4294901760, %v3370_v56  ;;  %v4420_v56 = vld [vmem:[#allocation41_spill] sm:$0xff]  ;;  %v4441_v10 = vld [vmem:[#allocation46_spill] sm:$0xff] }
 0x22f   : > { %1253 = vmatpush.msra.mxu2 %v3499_v47  ;;  %1295 = vmatpush.msra.mxu3 %v3484_v61  ;;  %v4401_v61 = vand.u32 4294901760, %v3366_v23  ;;  %v4404_v23 = vand.u32 4294901760, %v3378_v17  ;;  %v4424_v17 = vld [vmem:[#allocation43_spill] sm:$0xff] }
 0x230   : > { %1182 = vmatpush.msra.mxu1 %v1181_v11  ;;  %1101 = vmatpush.msra.mxu0 %v3509_v3  ;;  %v1205_v11 = vand.u32 4294901760, %v1204_v19  ;;  %v4444_v19 = vld [vmem:[#allocation62_spill] sm:$0xff] }
 0x231   : > { %1256 = vmatpush.msra.mxu2 %v3523_v28  ;;  %1297 = vmatpush.msra.mxu3 %v3509_v3 }
 0x232   : > { %1308 = vmatpush.msrb.mxu0 %v4400_v8  ;;  %1188 = vmatpush.msra.mxu1 %v1187_v44  ;;  %v4440_v44 = vld [vmem:[#allocation57_spill] sm:$0xff]  ;;  %v4445_v8 = vld [vmem:[#allocation51_spill] sm:$0xff] }
 0x233   : > { %1259 = vmatpush.msra.mxu2 %v3536_v1  ;;  %1301 = vmatmul.f32.vlgmr.msra.gmra.mxu3 %v1104_v24  ;;  %v4405_v24 = vand.u32 4294901760, %v3382_v50  ;;  %v4426_v1 = vld [vmem:[#allocation68_spill] sm:$0xff]  ;;  %v4428_v50 = vld [vmem:[#allocation45_spill] sm:$0xff] }
 0x234   : > { %1312 = vmatpush.msrb.mxu0 %v4401_v61  ;;  %1194 = vmatpush.msra.mxu1 %v1193_v40  ;;  %v4436_v61 = vld [vmem:[#allocation53_spill] sm:$0xff]  ;;  %v4443_v40 = vld [vmem:[#allocation48_spill] sm:$0xff] }
 0x235   : > { %1262 = vmatmul.f32.vlgmr.msra.gmra.mxu2 %v1103_v5  ;;  %1107 = vmatmul.f32.vlgmr.msra.gmra.mxu0 %v1106_v31  ;;  %v4406_v31 = vand.u32 4294901760, %v3397_v14  ;;  %v4409_v14 = vand.u32 4294901760, %v3450_v7  ;;  %v4413_v7 = vld [vmem:[#allocation65_spill] sm:$0xff]  ;;  %v4438_v5 = vld [vmem:[#allocation55_spill] sm:$0xff] }
 0x236   : > { %1316 = vmatpush.msrb.mxu0 %v4402_v20  ;;  %1200 = vmatpush.msra.mxu1 %v1199_v51  ;;  %v4439_v51 = vld [vmem:[#allocation44_spill] sm:$0xff] }
 0x237   : > { %1466 = vmatpush.msrb.mxu3 %v2901_v38  ;;  %1421 = vmatpush.msrb.mxu2 %v2868_v57  ;;  %v4447_v20 = vld [vmem:[#allocation52_spill] sm:$0xff] }
 0x238   : > { %1320 = vmatpush.msrb.mxu0 %v4403_v30  ;;  %1206 = vmatpush.msra.mxu1 %v1205_v11  ;;  %v4446_v11 = vld [vmem:[#allocation67_spill] sm:$0xff]  ;;  %v4448_v30 = vld [vmem:[#allocation70_spill] sm:$0xff] }
 0x239   : > { %1208 = vmatmul.f32.vlgmr.msra.gmra.mxu1 %v3514_v22  ;;  %1472 = vmatpush.msrb.mxu3 %v2917_v49 }
 0x23a   : > { %1375 = vmatpush.msrb.mxu1 %v3339_v53  ;;  %1324 = vmatpush.msrb.mxu0 %v4404_v23  ;;  %v4407_v53 = vand.u32 4294901760, %v3415_v9  ;;  %v4410_v9 = vand.u32 4294901760, %v3464_v25  ;;  %v4434_v25 = vld [vmem:[#allocation50_spill] sm:$0xff] }
 0x23b   : > { %1478 = vmatpush.msrb.mxu3 %v2933_v42  ;;  %1423 = vmatpush.msrb.mxu2 %v2873_v60  ;;  %v4449_v23 = vld [vmem:[#allocation54_spill] sm:$0xff] }
 0x23c   : > { %1377 = vmatpush.msrb.mxu1 %v3342_v52  ;;  %1328 = vmatpush.msrb.mxu0 %v4405_v24  ;;  %v4408_v52 = vand.u32 4294901760, %v3436_v12  ;;  %v4432_v12 = vld [vmem:[#allocation49_spill] sm:$0xff]  ;;  %v4450_v24 = vld [vmem:[#allocation74_spill] sm:$0xff] }
 0x23d   : > { %1484 = vmatpush.msrb.mxu3 %v2948_v43  ;;  %1425 = vmatpush.msrb.mxu2 %v2883_v55 }
 0x23e   : > { %1379 = vmatpush.msrb.mxu1 %v3345_v63  ;;  %1332 = vmatpush.msrb.mxu0 %v4406_v31  ;;  %v4411_v63 = vld [vmem:[#allocation61_spill] sm:$0xff]  ;;  %v4451_v31 = vld [vmem:[#allocation56_spill] sm:$0xff] }
 0x23f   : > { %1490 = vmatpush.msrb.mxu3 %v2975_v16  ;;  %1427 = vmatpush.msrb.mxu2 %v2896_v34 }
 0x240   : > { %1381 = vmatpush.msrb.mxu1 %v3348_v33  ;;  %1336 = vmatpush.msrb.mxu0 %v4407_v53  ;;  %v4412_v33 = vand.u32 4294901760, %v3481_v58  ;;  %v4433_v58 = vld [vmem:[#allocation75_spill] sm:$0xff]  ;;  %v4452_v53 = vld [vmem:[#allocation78_spill] sm:$0xff] }
 0x241   : > { %1496 = vmatpush.msrb.mxu3 %v2979_v18  ;;  %1429 = vmatpush.msrb.mxu2 %v2913_v46 }
 0x242   : > { %1383 = vmatpush.msrb.mxu1 %v3351_v29  ;;  %1340 = vmatpush.msrb.mxu0 %v4408_v52  ;;  %v4414_v29 = vand.u32 4294901760, %v3495_v4  ;;  %v4418_v4 = vld [vmem:[#allocation59_spill] sm:$0xff]  ;;  %v4453_v52 = vld [vmem:[#allocation58_spill] sm:$0xff] }
 0x243   : > { %1502 = vmatpush.msrb.mxu3 %v2994_v45  ;;  %1431 = vmatpush.msrb.mxu2 %v2924_v54 }
 0x244   : > { %1385 = vmatpush.msrb.mxu1 %v3354_v62  ;;  %1344 = vmatpush.msrb.mxu0 %v4409_v14  ;;  %v4415_v62 = vld [vmem:[#allocation72_spill] sm:$0xff] }
 0x245   : > { %1508 = vmatpush.msrb.mxu3 %v4411_v63  ;;  %1433 = vmatpush.msrb.mxu2 %v2940_v37  ;;  %v4454_v14 = vld [vmem:[#allocation80_spill] sm:$0xff]  ;;  %v4456_v63 = vld [vmem:[#allocation87_spill] sm:$0xff] }
 0x246   : > { %1387 = vmatpush.msrb.mxu1 %v3357_v27  ;;  %1348 = vmatpush.msrb.mxu0 %v4410_v9  ;;  %v4416_v27 = vand.u32 4294901760, %v3499_v47  ;;  %v4419_v47 = vld [vmem:[#allocation79_spill] sm:$0xff]  ;;  %v4455_v9 = vld [vmem:[#allocation64_spill] sm:$0xff] }
 0x247   : > { %1514 = vmatpush.msrb.mxu3 %v4413_v7  ;;  %1435 = vmatpush.msrb.mxu2 %v2956_v35  ;;  %v4458_v7 = vld [vmem:[#allocation89_spill] sm:$0xff] }
 0x248   : > { %1389 = vmatpush.msrb.mxu1 %v3385_v36  ;;  %1352 = vmatpush.msrb.mxu0 %v4412_v33  ;;  %v4429_v36 = vld [vmem:[#allocation85_spill] sm:$0xff]  ;;  %v4457_v33 = vld [vmem:[#allocation66_spill] sm:$0xff] }
 0x249   : > { %1520 = vmatpush.msrb.mxu3 %v4415_v62  ;;  %1437 = vmatpush.msrb.mxu2 %v2972_v32  ;;  %v4460_v62 = vld [vmem:[#allocation92_spill] sm:$0xff] }
 0x24a   : > { %1391 = vmatpush.msrb.mxu1 %v3411_v48  ;;  %1356 = vmatpush.msrb.mxu0 %v4414_v29  ;;  %v4417_v48 = vand.u32 4294901760, %v3523_v28  ;;  %v4422_v28 = vld [vmem:[#allocation63_spill] sm:$0xff]  ;;  %v4459_v29 = vld [vmem:[#allocation69_spill] sm:$0xff] }
 0x24b   : > { %1526 = vmatpush.msrb.mxu3 %v3058_v41  ;;  %1439 = vmatpush.msrb.mxu2 %v2991_v39 }
 0x24c   : > { %1393 = vmatpush.msrb.mxu1 %v3432_v15  ;;  %1360 = vmatpush.msrb.mxu0 %v4416_v27  ;;  %v4431_v15 = vld [vmem:[#allocation47_spill] sm:$0xff]  ;;  %v4461_v27 = vld [vmem:[#allocation73_spill] sm:$0xff] }
 0x24d   : > { %1532 = vmatpush.msrb.mxu3 %v3074_v26  ;;  %1441 = vmatpush.msrb.mxu2 %v4418_v4 }
 0x24e   : > { %1395 = vmatpush.msrb.mxu1 %v3439_v13  ;;  %1364 = vmatpush.msrb.mxu0 %v4417_v48  ;;  %v4421_v13 = vld [vmem:[#allocation82_spill] sm:$0xff]  ;;  %v4462_v48 = vld [vmem:[#allocation95_spill] sm:$0xff] }
 0x24f   : > { %1538 = vmatpush.msrb.mxu3 %v4419_v47  ;;  %1443 = vmatpush.msrb.mxu2 %v4422_v28  ;;  %v4463_v47 = vld [vmem:[#allocation76_spill] sm:$0xff] }
 0x250   : > { %1397 = vmatpush.msrb.mxu1 %v3453_v59  ;;  %1368 = vmatpush.msrb.mxu0 %v1203_v0  ;;  %v4425_v59 = vld [vmem:[#allocation84_spill] sm:$0xff]  ;;  %v4427_v0 = vld [vmem:[#allocation122_spill] sm:$0xff] }
 0x251   : > { %1370 = vmatmul.f32.vlgmr.msrb.gmra.mxu0 %v3514_v22  ;;  %1544 = vmatpush.msrb.mxu3 %v4421_v13  ;;  %v4465_v13 = vld [vmem:[#allocation99_spill] sm:$0xff] }
 0x252   : > { %1399 = vmatpush.msrb.mxu1 %v3467_v6  ;;  %1564 = vmatpush.msra.mxu0 %v4420_v56  ;;  %v4430_v6 = vld [vmem:[#allocation71_spill] sm:$0xff]  ;;  %v4464_v56 = vld [vmem:[#allocation96_spill] sm:$0xff] }
 0x253   : > { %1550 = vmatpush.msrb.mxu3 %v4425_v59  ;;  %1445 = vmatpush.msrb.mxu2 %v4426_v1  ;;  %v4468_v59 = vld [vmem:[#allocation103_spill] sm:$0xff] }
 0x254   : > { %1401 = vmatpush.msrb.mxu1 %v4423_v21  ;;  %1567 = vmatpush.msra.mxu0 %v4424_v17  ;;  %v4466_v21 = vld [vmem:[#allocation81_spill] sm:$0xff]  ;;  %v4467_v17 = vld [vmem:[#allocation100_spill] sm:$0xff] }
 0x255   : > { %1556 = vmatpush.msrb.mxu3 %v4429_v36  ;;  %1447 = vmatpush.msrb.mxu2 %v4430_v6  ;;  %v4471_v36 = vld [vmem:[#allocation107_spill] sm:$0xff] }
 0x256   : > { %1403 = vmatpush.msrb.mxu1 %v4427_v0  ;;  %1570 = vmatpush.msra.mxu0 %v4428_v50  ;;  %v4469_v0 = vld [vmem:[#allocation83_spill] sm:$0xff]  ;;  %v4470_v50 = vld [vmem:[#allocation104_spill] sm:$0xff] }
 0x257   : > { %1725 = vmatpush.msra.mxu3 %v2868_v57  ;;  %1449 = vmatpush.msrb.mxu2 %v4433_v58 }
 0x258   : > { %1405 = vmatpush.msrb.mxu1 %v3509_v3  ;;  %1573 = vmatpush.msra.mxu0 %v4431_v15  ;;  %v4435_v3 = vld [vmem:[#allocation77_spill] sm:$0xff]  ;;  %v4472_v15 = vld [vmem:[#allocation108_spill] sm:$0xff] }
 0x259   : > { %1407 = vmatmul.f32.vlgmr.msrb.gmra.mxu1 %v3514_v22  ;;  %1727 = vmatpush.msra.mxu3 %v2873_v60  ;;  %v4437_v22 = vld [vmem:[#allocation42_spill] sm:$0xff] }
 0x25a   : > { %1617 = vmatpush.msra.mxu1 %v2868_v57  ;;  %1576 = vmatpush.msra.mxu0 %v4432_v12  ;;  %v4473_v12 = vld [vmem:[#allocation111_spill] sm:$0xff] }
 0x25b   : > { %1729 = vmatpush.msra.mxu3 %v2883_v55  ;;  %1451 = vmatpush.msrb.mxu2 %v4435_v3 }
 0x25c   : > { %1619 = vmatpush.msra.mxu1 %v2873_v60  ;;  %1579 = vmatpush.msra.mxu0 %v4434_v25  ;;  %v4474_v25 = vld [vmem:[#allocation112_spill] sm:$0xff] }
 0x25d   : > { %1731 = vmatpush.msra.mxu3 %v2896_v34  ;;  %1658 = vmatpush.msra.mxu2 %v4437_v22  ;;  %v4476_v22 = vld [vmem:[#allocation117_spill] sm:$0xff] }
 0x25e   : > { %1621 = vmatpush.msra.mxu1 %v2883_v55  ;;  %1582 = vmatpush.msra.mxu0 %v4436_v61  ;;  %v4475_v61 = vld [vmem:[#allocation115_spill] sm:$0xff] }
 0x25f   : > { %1733 = vmatpush.msra.mxu3 %v2913_v46  ;;  %1662 = vmatpush.msra.mxu2 %v4439_v51 }
 0x260   : > { %1623 = vmatpush.msra.mxu1 %v2896_v34  ;;  %1585 = vmatpush.msra.mxu0 %v4438_v5  ;;  %v4477_v5 = vld [vmem:[#allocation118_spill] sm:$0xff] }
 0x261   : > { %1735 = vmatpush.msra.mxu3 %v2924_v54  ;;  %1666 = vmatpush.msra.mxu2 %v4441_v10 }
 0x262   : > { %1625 = vmatpush.msra.mxu1 %v2913_v46  ;;  %1588 = vmatpush.msra.mxu0 %v4440_v44  ;;  %v4478_v44 = vld [vmem:[#allocation86_spill] sm:$0xff] }
 0x263   : > { %1737 = vmatpush.msra.mxu3 %v2940_v37  ;;  %1670 = vmatpush.msra.mxu2 %v4443_v40 }
 0x264   : > { %1627 = vmatpush.msra.mxu1 %v2924_v54  ;;  %1591 = vmatpush.msra.mxu0 %v4442_v2 }
 0x265   : > { %1739 = vmatpush.msra.mxu3 %v2956_v35  ;;  %1674 = vmatpush.msra.mxu2 %v4445_v8 }
 0x266   : > { %1629 = vmatpush.msra.mxu1 %v2940_v37  ;;  %1594 = vmatpush.msra.mxu0 %v4444_v19 }
 0x267   : > { %1741 = vmatpush.msra.mxu3 %v2972_v32  ;;  %1678 = vmatpush.msra.mxu2 %v4447_v20 }
 0x268   : > { %1631 = vmatpush.msra.mxu1 %v2956_v35  ;;  %1597 = vmatpush.msra.mxu0 %v4446_v11 }
 0x269   : > { %1743 = vmatpush.msra.mxu3 %v2991_v39  ;;  %1682 = vmatpush.msra.mxu2 %v4449_v23 }
 0x26a   : > { %1633 = vmatpush.msra.mxu1 %v2972_v32  ;;  %1600 = vmatpush.msra.mxu0 %v4448_v30 }
 0x26b   : > { %1745 = vmatpush.msra.mxu3 %v4418_v4  ;;  %1686 = vmatpush.msra.mxu2 %v4451_v31 }
 0x26c   : > { %1635 = vmatpush.msra.mxu1 %v2991_v39  ;;  %1603 = vmatpush.msra.mxu0 %v4450_v24 }
 0x26d   : > { %1747 = vmatpush.msra.mxu3 %v4422_v28  ;;  %1690 = vmatpush.msra.mxu2 %v4453_v52 }
 0x26e   : > { %1637 = vmatpush.msra.mxu1 %v4418_v4  ;;  %1606 = vmatpush.msra.mxu0 %v4452_v53 }
 0x26f   : > { %1749 = vmatpush.msra.mxu3 %v4426_v1  ;;  %1694 = vmatpush.msra.mxu2 %v4455_v9 }
 0x270   : > { %1639 = vmatpush.msra.mxu1 %v4422_v28  ;;  %1609 = vmatpush.msra.mxu0 %v4454_v14 }
 0x271   : > { %1751 = vmatpush.msra.mxu3 %v4430_v6  ;;  %1698 = vmatpush.msra.mxu2 %v4457_v33 }
 0x272   : > { %1641 = vmatpush.msra.mxu1 %v4426_v1  ;;  %1773 = vmatpush.msrb.mxu0 %v4456_v63 }
 0x273   : > { %1753 = vmatpush.msra.mxu3 %v4433_v58  ;;  %1702 = vmatpush.msra.mxu2 %v4459_v29 }
 0x274   : > { %1643 = vmatpush.msra.mxu1 %v4430_v6  ;;  %1775 = vmatpush.msrb.mxu0 %v4458_v7 }
 0x275   : > { %1755 = vmatpush.msra.mxu3 %v4435_v3  ;;  %1706 = vmatpush.msra.mxu2 %v4461_v27 }
 0x276   : > { %1645 = vmatpush.msra.mxu1 %v4433_v58  ;;  %1777 = vmatpush.msrb.mxu0 %v4460_v62 }
 0x277   : > { %1710 = vmatpush.msra.mxu2 %v4463_v47 }
 0x278   : > { %1647 = vmatpush.msra.mxu1 %v4435_v3  ;;  %1779 = vmatpush.msrb.mxu0 %v4462_v48 }
 0x279   : > { %1714 = vmatpush.msra.mxu2 %v4466_v21 }
 0x27a   : > { %1810 = vmatpush.msrb.mxu1 %v4464_v56  ;;  %1781 = vmatpush.msrb.mxu0 %v4465_v13 }
 0x27b   : > { %1718 = vmatpush.msra.mxu2 %v4469_v0 }
 0x27c   : > { %1816 = vmatpush.msrb.mxu1 %v4467_v17  ;;  %1783 = vmatpush.msrb.mxu0 %v4468_v59 }
 0x27e   : > { %1822 = vmatpush.msrb.mxu1 %v4470_v50  ;;  %1785 = vmatpush.msrb.mxu0 %v4471_v36  ;;  %v4479_v50 = vld [vmem:[#allocation90_spill] sm:$0xff] }
 0x280   : > { %1828 = vmatpush.msrb.mxu1 %v4472_v15  ;;  %1787 = vmatpush.msrb.mxu0 %v4473_v12 }
 0x282   : > { %1834 = vmatpush.msrb.mxu1 %v4474_v25 }
 0x284   : > { %1840 = vmatpush.msrb.mxu1 %v4475_v61  ;;  %v4480_v61 = vld [vmem:[#allocation93_spill] sm:$0xff] }
 0x286   : > { %1846 = vmatpush.msrb.mxu1 %v4476_v22  ;;  %v4481_v22 = vld [vmem:[#allocation88_spill] sm:$0xff] }
 0x288   : > { %1852 = vmatpush.msrb.mxu1 %v4477_v5  ;;  %v4482_v5 = vld [vmem:[#allocation97_spill] sm:$0xff] }
 0x2b2   : > { %v1108_v51 = vpop.f32.mrf.mxu0 }
 0x2b3   : > { %v1109_v10 = vadd.f32 %v1108_v51, %v4478_v44  ;;  %v4483_v51 = vld [vmem:[#allocation91_spill] sm:$0xff]  ;;  %v4484_v44 = vld [vmem:[#allocation101_spill] sm:$0xff] }
 0x2b6   : > { %v1209_v2 = vpop.f32.mrf.mxu1  ;;  %v1302_v11 = vpop.f32.mrf.mxu3 }
 0x2b7   : > { %v1210_v40 = vadd.f32 %v1209_v2, %v1109_v10  ;;  %v4485_v10 = vld [vmem:[#allocation94_spill] sm:$0xff]  ;;  %v4486_v2 = vld [vmem:[#allocation105_spill] sm:$0xff] }
 0x2b8   : > { %v1263_v19 = vpop.f32.mrf.mxu2 }
 0x2b9   : > { %v1264_v8 = vadd.f32 %v1263_v19, %v1210_v40  ;;  %v4487_v40 = vld [vmem:[#allocation98_spill] sm:$0xff] }
 0x2ba   : > { %v4488_v19 = vld [vmem:[#allocation102_spill] sm:$0xff] }
 0x2bb   : > { %v1303_v20 = vadd.f32 %v1302_v11, %v1264_v8  ;;  %v4489_v8 = vld [vmem:[#allocation109_spill] sm:$0xff]  ;;  %v4490_v11 = vld [vmem:[#allocation106_spill] sm:$0xff] }
 0x2ce   : > { %v1371_v30 = vpop.f32.mrf.mxu0 }
 0x2cf   : > { %v1372_v23 = vadd.f32 %v1371_v30, %v1303_v20  ;;  %v4491_v20 = vld [vmem:[#allocation113_spill] sm:$0xff]  ;;  %v4492_v30 = vld [vmem:[#allocation110_spill] sm:$0xff] }
 0x2d6   : > { %v1408_v24 = vpop.f32.mrf.mxu1 }
 0x2d7   : > { %v1409_v31 = vadd.f32 %v1408_v24, %v1372_v23  ;;  %v4493_v23 = vld [vmem:[#allocation116_spill] sm:$0xff]  ;;  %v4494_v24 = vld [vmem:[#allocation114_spill] sm:$0xff] }
 0x2d9   : > { %v1412_v53 = vand.u32 2147483647, %v1409_v31  ;;  %v1411_v27 = vmax.f32 %v1409_v31, 0.0 }
 0x2db   : > { %v1413_v52 = vsub.f32 0.0, %v1412_v53 }
 0x2dd   : > { %v1414_v14 = vmul.f32 1.442695, %v1413_v52  ;;  %v4495_v52 = vld [vmem:[#allocation119_spill] sm:$0xff] }
 0x2df   : > { %2636 = vpow2.f32 %v1414_v14 }
 0x2e5   : > { %v2637_v9 = vpop.eup %2636 }
 0x2e6   : > { %v1416_v33 = vadd.f32 1.0, %v2637_v9 }
 0x2e8   : > { %2638 = vlog2.f32 %v1416_v33 }
 0x2ee   : > { %v2639_v29 = vpop.eup %2638 }
 0x2ef   : > { %v1418_v47 = vmul.f32 0.6931472, %v2639_v29 }
 0x2f1   : > { %v1419_v56 = vadd.f32 %v1418_v47, %v1411_v27 }
 0x2f3   : > { %v1452_v21 = vand.u32 4294901760, %v1419_v56 }
 0x2f5   : > { %v1453_v17 = vsub.f32 %v1419_v56, %v1452_v21  ;;  %1558 = vmatmul.f32.vlgmr.msrb.gmra.mxu3 %v1452_v21 }
 0x2f6   : > { %1905 = vmatpush.msrb.mxu3 %v4456_v63 }
 0x2f7   : > { %1612 = vmatmul.f32.vlgmr.msra.gmra.mxu0 %v1453_v17  ;;  %v1454_v0 = vand.u32 4294901760, %v1453_v17 }
 0x2f8   : > { %1907 = vmatpush.msrb.mxu3 %v4458_v7  ;;  %1938 = vmatpush.msra.mxu0 %v4479_v50 }
 0x2f9   : > { %1651 = vmatmul.f32.vlgmr.msra.gmra.mxu1 %v1454_v0  ;;  %v1455_v15 = vsub.f32 %v1453_v17, %v1454_v0 }
 0x2fa   : > { %1909 = vmatpush.msrb.mxu3 %v4460_v62  ;;  %1981 = vmatpush.msra.mxu1 %v4456_v63 }
 0x2fb   : > { %v1456_v25 = vand.u32 4294901760, %v1455_v15  ;;  %1942 = vmatpush.msra.mxu0 %v4480_v61 }
 0x2fc   : > { %1911 = vmatpush.msrb.mxu3 %v4462_v48  ;;  %1983 = vmatpush.msra.mxu1 %v4458_v7 }
 0x2fd   : > { %1457 = vmatmul.f32.vlgmr.msrb.gmra.mxu2 %v1456_v25  ;;  %1757 = vmatmul.f32.vlgmr.msra.gmra.mxu3 %v1452_v21 }
 0x2fe   : > { %1868 = vmatpush.msrb.mxu2 %v4481_v22  ;;  %1913 = vmatpush.msrb.mxu3 %v4465_v13 }
 0x2ff   : > { %1985 = vmatpush.msra.mxu1 %v4460_v62  ;;  %1946 = vmatpush.msra.mxu0 %v4482_v5 }
 0x300   : > { %1871 = vmatpush.msrb.mxu2 %v4483_v51  ;;  %1915 = vmatpush.msrb.mxu3 %v4468_v59 }
 0x301   : > { %1987 = vmatpush.msra.mxu1 %v4462_v48  ;;  %1950 = vmatpush.msra.mxu0 %v4484_v44  ;;  %v4496_v44 = vld [vmem:[#allocation120_spill] sm:$0xff] }
 0x302   : > { %1874 = vmatpush.msrb.mxu2 %v4485_v10  ;;  %1917 = vmatpush.msrb.mxu3 %v4471_v36 }
 0x303   : > { %1989 = vmatpush.msra.mxu1 %v4465_v13  ;;  %1954 = vmatpush.msra.mxu0 %v4486_v2 }
 0x304   : > { %1877 = vmatpush.msrb.mxu2 %v4487_v40  ;;  %1919 = vmatpush.msrb.mxu3 %v4473_v12 }
 0x305   : > { %1720 = vmatmul.f32.vlgmr.msra.gmra.mxu2 %v1452_v21  ;;  %1991 = vmatpush.msra.mxu1 %v4468_v59 }
 0x306   : > { %1880 = vmatpush.msrb.mxu2 %v4488_v19  ;;  %1958 = vmatpush.msra.mxu0 %v4489_v8 }
 0x307   : > { %1993 = vmatpush.msra.mxu1 %v4471_v36 }
 0x308   : > { %1883 = vmatpush.msrb.mxu2 %v4490_v11  ;;  %1962 = vmatpush.msra.mxu0 %v4491_v20 }
 0x309   : > { %1995 = vmatpush.msra.mxu1 %v4473_v12 }
 0x30a   : > { %1886 = vmatpush.msrb.mxu2 %v4492_v30  ;;  %1966 = vmatpush.msra.mxu0 %v4493_v23 }
 0x30c   : > { %1889 = vmatpush.msrb.mxu2 %v4494_v24 }
 0x374   : > { %v1613_v33 = vpop.f32.mrf.mxu0 }
 0x376   : > { %v1652_v27 = vpop.f32.mrf.mxu1 }
 0x378   : > { %v1559_v31 = vpop.f32.mrf.mxu3 }
 0x380   : > { %v1458_v53 = vpop.f32.mrf.mxu2  ;;  %v1758_v17 = vpop.f32.mrf.mxu3 }
 0x381   : > { %v1459_v14 = vadd.f32 %v1458_v53, %v4495_v52 }
 0x383   : > { %v1560_v9 = vadd.f32 %v1559_v31, %v1459_v14 }
 0x385   : > { %v1614_v29 = vadd.f32 %v1613_v33, %v1560_v9 }
 0x387   : > { %v1653_v47 = vadd.f32 %v1652_v27, %v1614_v29 }
 0x388   : > { %v1721_v56 = vpop.f32.mrf.mxu2 }
 0x389   : > { %v1722_v21 = vadd.f32 %v1721_v56, %v1653_v47 }
 0x38b   : > { %v1759_v33 = vadd.f32 %v1758_v17, %v1722_v21  }
 0x38d   : > { %v1762_v0 = vsel %vm820_vm2, %v1759_v33, 0 }
 0x38e   : > { %v1788_v50 = vand.u32 4294901760, %v1762_v0 }
 0x390   : > { %v1789_v15 = vsub.f32 %v1762_v0, %v1788_v50  ;;  %1854 = vmatmul.f32.vlgmr.msrb.gmra.mxu1 %v1788_v50 }
 0x392   : > { %1892 = vmatmul.f32.vlgmr.msrb.gmra.mxu2 %v1789_v15  ;;  %v1790_v25 = vand.u32 4294901760, %v1789_v15 }
 0x394   : > { %1923 = vmatmul.f32.vlgmr.msrb.gmra.mxu3 %v1790_v25  ;;  %v1791_v61 = vsub.f32 %v1789_v15, %v1790_v25 }
 0x396   : > { %v1792_v22 = vand.u32 4294901760, %v1791_v61 }
 0x398   : > { %1793 = vmatmul.f32.vlgmr.msrb.gmra.mxu0 %v1792_v22  ;;  %1997 = vmatmul.f32.vlgmr.msra.gmra.mxu1 %v1788_v50 }
 0x3a0   : > { %1968 = vmatmul.f32.vlgmr.msra.gmra.mxu0 %v1788_v50 }
 0x40d   : > { %v1855_v5 = vpop.f32.mrf.mxu1 }
 0x415   : > { %v1794_v51 = vpop.f32.mrf.mxu0  ;;  %v1893_v40 = vpop.f32.mrf.mxu2 }
 0x416   : > { %v1795_v10 = vadd.f32 %v1794_v51, %v4496_v44  ;;  %v1998_v23 = vpop.f32.mrf.mxu1 }
 0x417   : > { %v1924_v8 = vpop.f32.mrf.mxu3 }
 0x418   : > { %v1856_v2 = vadd.f32 %v1855_v5, %v1795_v10 }
 0x41a   : > { %v1894_v19 = vadd.f32 %v1893_v40, %v1856_v2 }
 0x41c   : > { %v1925_v11 = vadd.f32 %v1924_v8, %v1894_v19 }
 0x41d   : > { %v1969_v20 = vpop.f32.mrf.mxu0 }
 0x41e   : > { %v1970_v30 = vadd.f32 %v1969_v20, %v1925_v11 }
 0x420   : > { %v1999_v24 = vadd.f32 %v1998_v23, %v1970_v30  ;;  %1067 = sbr.rel (!%p1064_p1) target bundleno = 524 (0x20c), region = 59 }
 0x422   : > { %v2001_v31 = vmax.f32 %v1999_v24, 0.0  }
 0x424   : > { %v4497_v19 = vmov %v2001_v31  ;;  %v4498_v25 = vmov (%p1064_p1), %v2001_v31 }
 0x425 PF:  { %s2703_s24 = smov 16   ;;  %p2343_p2 = scmp.eq.s32.totalorder %s4118_s0, 1  ;;  %v4501_v38 = vld [vmem:[#allocation39_spill] sm:$0xff]  ;;  %v4502_v46 = vld [vmem:[#allocation38_spill] sm:$0xff]  ;;  %v4503_v54 = vld [vmem:[#allocation37_spill] sm:$0xff]  ;;  %vm2555_vm6 = vcmask 253952   ;;  %v2698_v25 = vphi %v4370_v25, %v4498_v25   ;;  %v2694_v33 = vphi %v818_v33, %v1759_v33  }
 0x426   :  { %2348 = vrot.lane.b32.xlu0 %v2694_v33, %s2703_s24  ;;  %p2352_p3 = scmp.eq.s32.totalorder %s4118_s0, 2  ;;  %v3800_v41 = vand.u32 4294901760, %v4501_v38  ;;  %v3803_v49 = vand.u32 4294901760, %v4502_v46  ;;  %v3806_v42 = vand.u32 4294901760, %v4503_v54  ;;  %v4504_v37 = vld [vmem:[#allocation36_spill] sm:$0xff]  ;;  %v4505_v35 = vld [vmem:[#allocation35_spill] sm:$0xff] }
 0x427   :  { %s2344_s27 = scalar_select %p2343_p2, 1, 0  ;;  %v3809_v43 = vand.u32 4294901760, %v4504_v37  ;;  %v3812_v39 = vand.u32 4294901760, %v4505_v35  ;;  %v4506_v45 = vld [vmem:[#allocation34_spill] sm:$0xff]  ;;  %v4507_v4 = vld [vmem:[#allocation33_spill] sm:$0xff] }
 0x428   :  { %s2353_s29 = scalar_select %p2352_p3, 1, 0  ;;  %v3815_v26 = vand.u32 4294901760, %v4506_v45  ;;  %v3818_v28 = vand.u32 4294901760, %v4507_v4  ;;  %2003 = vmatpush.msra.mxu0 %v3800_v41  ;;  %v3823_v1 = vsub.f32 %v4501_v38, %v3800_v41  ;;  %v3827_v6 = vsub.f32 %v4502_v46, %v3803_v49  ;;  %2199 = vmatpush.msra.mxu3 %v3800_v41  ;;  %v4508_v62 = vld [vmem:[#allocation32_spill] sm:$0xff]  ;;  %v4509_v27 = vld [vmem:[#allocation31_spill] sm:$0xff] }
 0x429   :  { %v2345_v16 = vstv %s2344_s27  ;;  %v3831_v58 = vsub.f32 %v4503_v54, %v3806_v42  ;;  %v3835_v3 = vsub.f32 %v4504_v37, %v3809_v43  ;;  %v3839_v63 = vsub.f32 %v4505_v35, %v3812_v39  ;;  %v4510_v5 = vld [vmem:[#allocation30_spill] sm:$0xff]  ;;  %v4511_v10 = vld [vmem:[#allocation29_spill] sm:$0xff]  ;;  %v4512_v20 = vld [vmem:[#allocation28_spill] sm:$0xff]  ;;  %p2361_p4 = scmp.eq.s32.totalorder %s4118_s0, 3  ;;  %s2704_s0 = smov 80  }
 0x42a   :  { %vm3788_vm3 = vcmp.eq.s32.totalorder %v2345_v16, 1  ;;  %v2354_v60 = vstv %s2353_s29  ;;  %v3843_v7 = vsub.f32 %v4506_v45, %v3815_v26  ;;  %v3847_v48 = vand.u32 4294901760, %v4508_v62  ;;  %2005 = vmatpush.msra.mxu0 %v3803_v49  ;;  %2146 = vmatpush.msra.mxu2 %v3823_v1  ;;  %v4514_v46 = vld [vmem:[#allocation26_spill] sm:$0xff]  ;;  %s2705_s13 = smov 96   ;;  %s2706_s14 = smov 64  }
 0x42b   :  { %vm2355_vm4 = vcmp.eq.s32.totalorder %v2354_v60, 1  ;;  %v2045_v13 = vand.u32 4294901760, %v3823_v1  ;;  %v2051_v59 = vand.u32 4294901760, %v3827_v6  ;;  %v2057_v36 = vand.u32 4294901760, %v3831_v58  ;;  %2201 = vmatpush.msra.mxu3 %v3803_v49  ;;  %s2362_s10 = scalar_select %p2361_p4, 1, 0 }
 0x42c   :  { %v2063_v12 = vand.u32 4294901760, %v3835_v3  ;;  %v2069_v53 = vand.u32 4294901760, %v3839_v63  ;;  %v3858_v52 = vsub.f32 %v4507_v4, %v3818_v28  ;;  %2007 = vmatpush.msra.mxu0 %v3806_v42  ;;  %v3872_v47 = vand.u32 4294901760, %v4509_v27  ;;  %2149 = vmatpush.msra.mxu2 %v3827_v6 }
 0x42d   :  { %v2046_v14 = vsub.f32 %v3823_v1, %v2045_v13  ;;  %v2052_v9 = vsub.f32 %v3827_v6, %v2051_v59  ;;  %v2058_v29 = vsub.f32 %v3831_v58, %v2057_v36  ;;  %v3876_v56 = vsub.f32 %v4508_v62, %v3847_v48  ;;  %2203 = vmatpush.msra.mxu3 %v3806_v42  ;;  %v4515_v62 = vld [vmem:[#allocation25_spill] sm:$0xff] }
 0x42e   :  { %2009 = vmatpush.msra.mxu0 %v3809_v43  ;;  %v2064_v0 = vsub.f32 %v3835_v3, %v2063_v12  ;;  %v2075_v50 = vand.u32 4294901760, %v3843_v7  ;;  %v2070_v15 = vsub.f32 %v3839_v63, %v2069_v53  ;;  %v2081_v61 = vand.u32 4294901760, %v3858_v52  ;;  %2152 = vmatpush.msra.mxu2 %v3831_v58 }
 0x42f   :  { %v2047_v21 = vand.u32 4294901760, %v2046_v14  ;;  %v2053_v17 = vand.u32 4294901760, %v2052_v9  ;;  %2205 = vmatpush.msra.mxu3 %v3809_v43  ;;  %v2059_v22 = vand.u32 4294901760, %v2058_v29  ;;  %v3893_v51 = vand.u32 4294901760, %v4510_v5 }
 0x430   :  { %2011 = vmatpush.msra.mxu0 %v3812_v39  ;;  %v3897_v44 = vsub.f32 %v4509_v27, %v3872_v47  ;;  %v3900_v2 = vand.u32 4294901760, %v4511_v10  ;;  %v2087_v40 = vand.u32 4294901760, %v3876_v56  ;;  %2155 = vmatpush.msra.mxu2 %v3835_v3  ;;  %v2065_v19 = vand.u32 4294901760, %v2064_v0 }
 0x431   :  { %2048 = vmatpush.msra.mxu1 %v2047_v21  ;;  %2207 = vmatpush.msra.mxu3 %v3812_v39  ;;  %v2076_v8 = vsub.f32 %v3843_v7, %v2075_v50  ;;  %v3911_v11 = vsub.f32 %v4510_v5, %v3893_v51  ;;  %v3914_v30 = vand.u32 4294901760, %v4512_v20  ;;  %v2082_v23 = vsub.f32 %v3858_v52, %v2081_v61 }
 0x432   :  { %2013 = vmatpush.msra.mxu0 %v3815_v26  ;;  %2158 = vmatpush.msra.mxu2 %v3839_v63  ;;  %v2071_v24 = vand.u32 4294901760, %v2070_v15  ;;  %v2093_v31 = vand.u32 4294901760, %v3897_v44  ;;  %v3925_v16 = vsub.f32 %v4511_v10, %v3900_v2  ;;  %v2088_v60 = vsub.f32 %v3876_v56, %v2087_v40 }
 0x433   :  { %2054 = vmatpush.msra.mxu1 %v2053_v17  ;;  %2209 = vmatpush.msra.mxu3 %v3815_v26  ;;  %v3939_v38 = vsub.f32 %v4512_v20, %v3914_v30  ;;  %v3942_v54 = vand.u32 4294901760, %v4514_v46  ;;  %v2083_v37 = vand.u32 4294901760, %v2082_v23  ;;  %v3959_v14 = vand.u32 4294901760, %v4515_v62  ;;  %v4516_v17 = vld [vmem:[#allocation24_spill] sm:$0xff] }
 0x434   :  { %2015 = vmatpush.msra.mxu0 %v3818_v28  ;;  %2161 = vmatpush.msra.mxu2 %v3843_v7  ;;  %v2094_v35 = vsub.f32 %v3897_v44, %v2093_v31  ;;  %v2105_v45 = vand.u32 4294901760, %v3925_v16  ;;  %v2089_v9 = vand.u32 4294901760, %v2088_v60  ;;  %v3973_v0 = vand.u32 4294901760, %v4516_v17 }
 0x435   :  { %2060 = vmatpush.msra.mxu1 %v2059_v22  ;;  %2211 = vmatpush.msra.mxu3 %v3818_v28  ;;  %v2111_v27 = vand.u32 4294901760, %v3939_v38  ;;  %v3970_v21 = vsub.f32 %v4514_v46, %v3942_v54  ;;  %v3988_v10 = vsub.f32 %v4515_v62, %v3959_v14 }
 0x436   :  { %2017 = vmatpush.msra.mxu0 %v3847_v48  ;;  %2164 = vmatpush.msra.mxu2 %v3858_v52  ;;  %v2095_v15 = vand.u32 4294901760, %v2094_v35  ;;  %v2106_v22 = vsub.f32 %v3925_v16, %v2105_v45  ;;  %v2371_v52 = vld [vmem:[%s4124_s6 + $0x6] sm:$0x1] }
 0x437   :  { %2066 = vmatpush.msra.mxu1 %v2065_v19  ;;  %2213 = vmatpush.msra.mxu3 %v3847_v48  ;;  %v3993_v19 = vand.u32 4294901760, %v2698_v25  ;;  %v2112_v20 = vsub.f32 %v3939_v38, %v2111_v27  ;;  %v2123_v23 = vand.u32 4294901760, %v3970_v21  ;;  %v2129_v46 = vand.u32 4294901760, %v3988_v10 }
 0x438   :  { %2019 = vmatpush.msra.mxu0 %v3872_v47  ;;  %2167 = vmatpush.msra.mxu2 %v3876_v56  ;;  %v2107_v60 = vand.u32 4294901760, %v2106_v22 }
 0x439   :  { %2072 = vmatpush.msra.mxu1 %v2071_v24  ;;  %2215 = vmatpush.msra.mxu3 %v3872_v47  ;;  %v4002_v24 = vsub.f32 %v4516_v17, %v3973_v0  ;;  %v2113_v62 = vand.u32 4294901760, %v2112_v20 }
 0x43a   :  { %2021 = vmatpush.msra.mxu0 %v3893_v51  ;;  %2170 = vmatpush.msra.mxu2 %v3897_v44 }
 0x43b   :  { %2217 = vmatpush.msra.mxu3 %v3893_v51 }
 0x43c   :  { %2023 = vmatpush.msra.mxu0 %v3900_v2  ;;  %2173 = vmatpush.msra.mxu2 %v3911_v11 }
 0x43d   :  { %2219 = vmatpush.msra.mxu3 %v3900_v2 }
 0x43e   :  { %2025 = vmatpush.msra.mxu0 %v3914_v30  ;;  %2176 = vmatpush.msra.mxu2 %v3925_v16 }
 0x43f   :  { %2221 = vmatpush.msra.mxu3 %v3914_v30 }
 0x440   :  { %2179 = vmatpush.msra.mxu2 %v3939_v38 }
 0x498   :  { %v2349_v32 = vpop.permute.xlu0 %2348 }
 0x499   :  { %v2351_v57 = vsel %vm3788_vm3, %v2694_v33, %v2349_v32  ;;  %v4513_v32 = vld [vmem:[#allocation27_spill] sm:$0xff] }
 0x49a   :  { %2357 = vrot.lane.b32.xlu0 %v2351_v57, %s2703_s24  ;;  %v3928_v57 = vand.u32 4294901760, %v4513_v32 }
 0x49c   :  { %v3956_v4 = vsub.f32 %v4513_v32, %v3928_v57  ;;  %v2363_v32 = vstv %s2362_s10  ;;  %2027 = vmatpush.msra.mxu0 %v3928_v57  ;;  %2223 = vmatpush.msra.mxu3 %v3928_v57 }
 0x49d   :  { %vm4017_vm5 = vcmp.eq.s32.totalorder %v2363_v32, 1 }
 0x49e   :  { %v2117_v5 = vand.u32 4294901760, %v3956_v4  ;;  %2029 = vmatpush.msra.mxu0 %v3942_v54  ;;  %2225 = vmatpush.msra.mxu3 %v3942_v54 }
 0x49f   :  { %2182 = vmatpush.msra.mxu2 %v3956_v4 }
 0x4a0   :  { %2031 = vmatpush.msra.mxu0 %v3959_v14  ;;  %2227 = vmatpush.msra.mxu3 %v3959_v14 }
 0x4a1   :  { %2185 = vmatpush.msra.mxu2 %v3970_v21 }
 0x4a2   :  { %2033 = vmatpush.msra.mxu0 %v3973_v0  ;;  %2229 = vmatpush.msra.mxu3 %v3973_v0 }
 0x4a3   :  { %2188 = vmatpush.msra.mxu2 %v3988_v10 }
 0x4a4   :  { %2240 = vmatpush.msrb.mxu0 %v2045_v13 }
 0x4a5   :  { %2191 = vmatpush.msra.mxu2 %v4002_v24 }
 0x4a6   :  { %2244 = vmatpush.msrb.mxu0 %v2051_v59 }
 0x4a8   :  { %2248 = vmatpush.msrb.mxu0 %v2057_v36 }
 0x4aa   :  { %2252 = vmatpush.msrb.mxu0 %v2063_v12 }
 0x4ac   :  { %2256 = vmatpush.msrb.mxu0 %v2069_v53  ;;  %v2370_v53 = vld [vmem:[%s4124_s6 + $0x5] sm:$0x1] }
 0x4ae   :  { %2260 = vmatpush.msrb.mxu0 %v2075_v50 }
 0x4b0   :  { %2264 = vmatpush.msrb.mxu0 %v2081_v61 }
 0x4b2   :  { %2268 = vmatpush.msrb.mxu0 %v2087_v40 }
 0x4b4   :  { %2272 = vmatpush.msrb.mxu0 %v2093_v31 }
 0x50c   :  { %v2358_v55 = vpop.permute.xlu0 %2357 }
 0x50d   :  { %v2360_v34 = vsel %vm2355_vm4, %v2694_v33, %v2358_v55  ;;  %v2077_v55 = vand.u32 4294901760, %v2076_v8 }
 0x50e   :  { %2366 = vrot.lane.b32.xlu1 %v2360_v34, %s2703_s24  ;;  %v2099_v34 = vand.u32 4294901760, %v3911_v11 }
 0x50f   :  { %2078 = vmatpush.msra.mxu1 %v2077_v55  ;;  %v2118_v55 = vsub.f32 %v3956_v4, %v2117_v5  ;;  %v2379_v4 = vstv %s4119_s1 }
 0x510   :  { %v2100_v29 = vsub.f32 %v3911_v11, %v2099_v34  ;;  %2276 = vmatpush.msrb.mxu0 %v2099_v34 }
 0x511   :  { %2084 = vmatpush.msra.mxu1 %v2083_v37  ;;  %v4015_v37 = vsub.f32 %v2698_v25, %v3993_v19  ;;  %v2119_v17 = vand.u32 4294901760, %v2118_v55 }
 0x512   :  { %v2101_v8 = vand.u32 4294901760, %v2100_v29  ;;  %v2135_v29 = vand.u32 4294901760, %v4002_v24  ;;  %2280 = vmatpush.msrb.mxu0 %v2105_v45 }
 0x513   :  { %2090 = vmatpush.msra.mxu1 %v2089_v9  ;;  %v2124_v9 = vsub.f32 %v3970_v21, %v2123_v23  ;;  %2194 = vmatmul.f32.vlgmr.msra.gmra.mxu2 %v4015_v37 }
 0x514   :  { %v2136_v32 = vsub.f32 %v4002_v24, %v2135_v29  ;;  %2284 = vmatpush.msrb.mxu0 %v2111_v27 }
 0x515   :  { %2096 = vmatpush.msra.mxu1 %v2095_v15  ;;  %v2130_v15 = vsub.f32 %v3988_v10, %v2129_v46  ;;  %v2125_v20 = vand.u32 4294901760, %v2124_v9 }
 0x516   :  { %2288 = vmatpush.msrb.mxu0 %v2117_v5 }
 0x517   :  { %2102 = vmatpush.msra.mxu1 %v2101_v8  ;;  %v2036_v8 = vand.u32 4294901760, %v4015_v37 }
 0x518   :  { %2292 = vmatpush.msrb.mxu0 %v2123_v23 }
 0x519   :  { %2108 = vmatpush.msra.mxu1 %v2107_v60  ;;  %v2131_v60 = vand.u32 4294901760, %v2130_v15  ;;  %2233 = vmatmul.f32.vlgmr.msra.gmra.mxu3 %v2036_v8  ;;  %v2037_v36 = vsub.f32 %v4015_v37, %v2036_v8  ;;  %v2707_v15 = vmov 96  }
 0x51a   :  { %2296 = vmatpush.msrb.mxu0 %v2129_v46  ;;  %2640 = vset.pattern.permute.xlu1 %v2707_v15 }
 0x51b   :  { %2114 = vmatpush.msra.mxu1 %v2113_v62  ;;  %v2038_v12 = vand.u32 4294901760, %v2037_v36  ;;  %2641 = vset.pattern.permute.xlu0 %v2707_v15 }
 0x51c   :  { %2300 = vmatpush.msrb.mxu0 %v2135_v29 }
 0x51d   :  { %2120 = vmatpush.msra.mxu1 %v2119_v17  ;;  %2039 = vmatmul.f32.vlgmr.msra.gmra.mxu0 %v2038_v12 }
 0x51f   :  { %2126 = vmatpush.msra.mxu1 %v2125_v20  ;;  %v2560_v20 = vlaneseq }
 0x521   :  { %2132 = vmatpush.msra.mxu1 %v2131_v60 }
 0x525   :  { %2302 = vmatmul.f32.vlgmr.msrb.gmra.mxu0 %v3993_v19 }
 0x580   :  { %v2367_v25 = vpop.permute.xlu1 %2366 }
 0x581   :  { %v2369_v22 = vsel %vm4017_vm5, %v2694_v33, %v2367_v25  ;;  %v2137_v33 = vand.u32 4294901760, %v2136_v32  ;;  %v2561_v32 = vand.u32 127, %v2560_v20 }
 0x582   :  { %2382 = vrot.lane.b32.xlu1 %v2369_v22, %s2704_s0 }
 0x583   :  { %2138 = vmatpush.msra.mxu1 %v2137_v33  ;;  %vm2562_vm7 = vcmp.eq.s32.totalorder %v2561_v32, 32 }
 0x584   :  { %2140 = vmatmul.f32.vlgmr.msra.gmra.mxu1 %v3993_v19 }
 0x585   :  { %2307 = vmatpush.msrb.mxu1 %v3800_v41  ;;  %v2374_v41 = vld [vmem:[#allocation5 + $0x1f8] sm:$0xff] }
 0x587   :  { %2309 = vmatpush.msrb.mxu1 %v3803_v49  ;;  %v2376_v49 = vld [vmem:[#allocation5 + $0x208] sm:$0xff] }
 0x589   :  { %2311 = vmatpush.msrb.mxu1 %v3806_v42  ;;  %v2378_v42 = vsel %vm3788_vm3, %v2376_v49, %v2374_v41  ;;  %v2708_v49 = vmov 0.0  }
 0x58b   :  { %2313 = vmatpush.msrb.mxu1 %v3809_v43  ;;  %v2400_v43 = vand.u32 4294901760, %v2378_v42 }
 0x58d   :  { %2315 = vmatpush.msrb.mxu1 %v3812_v39  ;;  %v2373_v39 = vld [vmem:[#allocation5 + $0x1f0] sm:$0xff]  ;;  %v2428_v1 = vsub.f32 %v2378_v42, %v2400_v43  ;;  %2401 = vmatpush.msrb.mxu2 %v2400_v43  ;;  %v2590_v42 = vsel %vm2562_vm7, 1.0, %v2708_v49 }
 0x58f   :  { %2317 = vmatpush.msrb.mxu1 %v3815_v26  ;;  %v2375_v26 = vld [vmem:[#allocation5 + $0x200] sm:$0xff]  ;;  %v2429_v58 = vand.u32 4294901760, %v2428_v1 }
 0x591   :  { %2319 = vmatpush.msrb.mxu1 %v3818_v28  ;;  %v2377_v28 = vsel %vm3788_vm3, %v2375_v26, %v2373_v39  ;;  %v2430_v63 = vsub.f32 %v2428_v1, %v2429_v58 }
 0x592   :  { %v2402_v6 = vand.u32 4294901760, %v2377_v28 }
 0x593   :  { %2321 = vmatpush.msrb.mxu1 %v3847_v48  ;;  %v2431_v48 = vand.u32 4294901760, %v2430_v63 }
 0x594   :  { %v2434_v3 = vsub.f32 %v2377_v28, %v2402_v6  ;;  %2403 = vmatpush.msrb.mxu2 %v2402_v6 }
 0x595   :  { %2323 = vmatpush.msrb.mxu1 %v3872_v47  ;;  %2432 = vmatpush.msrb.mxu3 %v2431_v48  ;;  %v2372_v47 = vsel %vm3788_vm3, %v2371_v52, %v2370_v53 }
 0x596   :  { %2460 = vmatpush.msra.mxu2 %v2428_v1  ;;  %v2435_v7 = vand.u32 4294901760, %v2434_v3  ;;  %2546 = vrot.lane.b32.xlu2 %v2372_v47, %s2705_s13  ;;  %v2195_v16 = vpop.f32.mrf.mxu2  ;;  %v2380_v27 = vmul.f32 %v2379_v4, %v2372_v47 }
 0x597   :  { %2325 = vmatpush.msrb.mxu1 %v3893_v51 }
 0x598   :  { %2463 = vmatpush.msra.mxu2 %v2434_v3  ;;  %v2436_v13 = vsub.f32 %v2434_v3, %v2435_v7 }
 0x599   :  { %2327 = vmatpush.msrb.mxu1 %v3900_v2 }
 0x59a   :  { %v2437_v59 = vand.u32 4294901760, %v2436_v13  ;;  %v2040_v18 = vpop.f32.mrf.mxu0 }
 0x59b   :  { %2329 = vmatpush.msrb.mxu1 %v3914_v30  ;;  %v4519_v30 = vld [vmem:[#allocation40_spill] sm:$0xff] }
 0x59c   :  { %2438 = vmatpush.msrb.mxu3 %v2437_v59  ;;  %v2041_v31 = vadd.f32 %v2040_v18, %v4519_v30  ;;  %v2234_v38 = vpop.f32.mrf.mxu3 }
 0x59d   :  { %2331 = vmatpush.msrb.mxu1 %v3928_v57 }
 0x59e   :  { %2485 = vmatpush.msra.mxu3 %v2400_v43  ;;  %2551 = vrot.lane.b32.xlu2 %v2372_v47, %s2706_s14 }
 0x59f   :  { %2333 = vmatpush.msrb.mxu1 %v3942_v54 }
 0x5a0   :  { %2487 = vmatpush.msra.mxu3 %v2402_v6 }
 0x5a1   :  { %2335 = vmatpush.msrb.mxu1 %v3959_v14 }
 0x5a2   :  { %v2303_v60 = vpop.f32.mrf.mxu0 }
 0x5a3   :  { %2337 = vmatpush.msrb.mxu1 %v3973_v0 }
 0x5a4   :  { %2339 = vmatmul.f32.vlgmr.msrb.gmra.mxu1 %v3993_v19 }
 0x5f0   :  { %v2547_v23 = vpop.permute.xlu2 %2546 }
 0x5f4   :  { %v2383_v56 = vpop.permute.xlu1 %2382 }
 0x5f5   :  { %v2384_v50 = vsel %vm116_vm0, %v2383_v56, 0 }
 0x5f6   :  { %v2404_v61 = vand.u32 4294901760, %v2384_v50 }
 0x5f8   :  { %v2405_v51 = vsub.f32 %v2384_v50, %v2404_v61  ;;  %2440 = vmatmul.f32.vlgmr.msrb.gmra.mxu3 %v2404_v61  ;;  %v2552_v9 = vpop.permute.xlu2 %2551 }
 0x5f9   :  { %2537 = vmatpush.msrb.mxu3 %v2400_v43 }
 0x5fa   :  { %v2406_v44 = vand.u32 4294901760, %v2405_v51 }
 0x5fb   :  { %2539 = vmatpush.msrb.mxu3 %v2402_v6 }
 0x5fc   :  { %v2407_v2 = vsub.f32 %v2405_v51, %v2406_v44 }
 0x5fe   :  { %v2408_v40 = vand.u32 4294901760, %v2407_v2 }
 0x600   :  { %2409 = vmatmul.f32.vlgmr.msrb.gmra.mxu2 %v2408_v40  ;;  %2491 = vmatmul.f32.vlgmr.msra.gmra.mxu3 %v2406_v44 }
 0x601   :  { %2512 = vmatpush.msrb.mxu2 %v2429_v58  ;;  %v2141_v11 = vpop.f32.mrf.mxu1 }
 0x602   :  { %v2142_v57 = vadd.f32 %v2141_v11, %v2041_v31 }
 0x603   :  { %2516 = vmatpush.msrb.mxu2 %v2435_v7 }
 0x604   :  { %v2196_v34 = vadd.f32 %v2195_v16, %v2142_v57 }
 0x606   :  { %v2235_v54 = vadd.f32 %v2234_v38, %v2196_v34 }
 0x608   :  { %2466 = vmatmul.f32.vlgmr.msra.gmra.mxu2 %v2405_v51  ;;  %2541 = vmatmul.f32.vlgmr.msrb.gmra.mxu3 %v2404_v61  ;;  %v2304_v33 = vadd.f32 %v2303_v60, %v2235_v54 }
 0x610   :  { %2518 = vmatmul.f32.vlgmr.msrb.gmra.mxu2 %v2404_v61 }
 0x621   :  { %v2340_v41 = vpop.f32.mrf.mxu1 }
 0x622   :  { %v2341_v39 = vadd.f32 %v2340_v41, %v2304_v33 }
 0x67b   :  { %v2441_v45 = vpop.f32.mrf.mxu3 }
 0x683   :  { %v2410_v14 = vpop.f32.mrf.mxu2  ;;  %v2492_v0 = vpop.f32.mrf.mxu3 }
 0x684   :  { %v2411_v21 = vadd.f32 %v2410_v14, %v2380_v27 }
 0x686   :  { %v2442_v10 = vadd.f32 %v2441_v45, %v2411_v21 }
 0x68b   :  { %v2467_v5 = vpop.f32.mrf.mxu2  ;;  %v2542_v37 = vpop.f32.mrf.mxu3 }
 0x68c   :  { %v2468_v19 = vadd.f32 %v2467_v5, %v2442_v10 }
 0x68e   :  { %v2493_v24 = vadd.f32 %v2492_v0, %v2468_v19 }
 0x693   :  { %v2519_v55 = vpop.f32.mrf.mxu2 }
 0x694   :  { %v2520_v46 = vadd.f32 %v2519_v55, %v2493_v24 }
 0x696   :  { %v2543_v35 = vadd.f32 %v2542_v37, %v2520_v46 }
 0x698   :  { %v2549_v62 = vadd.f32 %v2547_v23, %v2543_v35 }
 0x69a   :  { %v2550_v29 = vmax.f32 %v2549_v62, 0.0 }
 0x69c   :  { %v2554_v25 = vmul.f32 %v2552_v9, %v2550_v29 }
 0x69e   :  { %v2556_v17 = vsel %vm2555_vm6, %v2554_v25, 0.0 }
 0x69f   :  { %2557 = vadd.xlane.f32.xlu0 %v2556_v17 }
 0x712   :  { %v2558_v22 = vpop.xlane.xlu0 %2557 }
 0x713   :  { %v2559_v8 = vadd.f32 %v2558_v22, %v2372_v47 }
 0x715   :  { %2567 = vperm.xlu1 %2640, %v2559_v8  }
 0x787   :  { %v2568_v43 = vpop.permute.xlu1 %2567 }
 0x788   :  { %v2570_v26 = vmul.f32 %v2590_v42, %v2568_v43 }
 0x78a   :  { %v2571_v28 = vadd.f32 %v2570_v26, %v2341_v39 }
 0x78c   :  { %2572 = vst [vmem:[%s4125_s7] sm:$0x1] %v2571_v28 }
 0x78d   :  { %2577 = vsyncpa [#allocation6], 1 }

</bundles_post_ra>
